<compile_context>
chip_gen: v7x
topology: tpu7x:2x2x1
jax: 0.10.0
libtpu: 0.0.40
codegen_flags: <defaults>
</compile_context>

<pallas_src>
import functools
import math

import jax
import jax.numpy as jnp
from jax import lax
from jax.experimental import pallas as pl
from jax.experimental.pallas import tpu as pltpu


# Scoped VMEM budget: below v7x's 64 MiB physical VMEM, well within v5e/v6e's 128 MiB.
_VMEM_LIMIT_BYTES = 48 * 1024 * 1024


# ---------------------------------------------------------------------------
# Helpers
# ---------------------------------------------------------------------------

def _pick_tile(M, preferred):
    """Largest row tile <= `preferred` that evenly divides M (falls back to full M)."""
    if M <= preferred:
        return M
    for t in (preferred, 512, 256, 128, 64, 32, 16, 8):
        if t <= preferred and M % t == 0:
            return t
    return M


def _const_spec(shape, index_map):
    """BlockSpec for grid-invariant operands (weights/biases): single-buffered to save VMEM."""
    try:
        return pl.BlockSpec(shape, index_map, pipeline_mode=pl.Buffered(1))
    except (TypeError, AttributeError):  # older pallas without pipeline_mode / Buffered
        return pl.BlockSpec(shape, index_map)


def _ln_f32(x, g, b, eps):
    """LayerNorm over the last axis; statistics in f32."""
    mean = jnp.mean(x, axis=-1, keepdims=True)
    var = jnp.mean((x - mean) ** 2, axis=-1, keepdims=True)
    return (x - mean) * lax.rsqrt(var + eps) * g + b


# ---------------------------------------------------------------------------
# Kernel 1: fused self-attention block
#   pos-add + QKV projection + multi-head attention + output projection + residual + LayerNorm.
#   grid = (B, L // tq).  Whole-sequence Q/K/V are projected once per batch element (query tile 0)
#   into VMEM scratch and stay resident across query tiles.
# ---------------------------------------------------------------------------

def _self_attn_kernel(x_ref, pos_ref, wqk_ref, bqk_ref, wv_ref, bv_ref,
                      wo_ref, bo_ref, g_ref, b_ref, o_ref,
                      q_scr, k_scr, v_scr, attn_scr,
                      *, n_head, scale, eps, tq):
    L, E = x_ref.shape
    hd = E // n_head
    qi = pl.program_id(1)

    # ---- Stage 1 (once per batch element): project full-sequence Q/K/V into VMEM scratch ----
    @pl.when(qi == 0)
    def _project_qkv():
        x = x_ref[...]                               # (L, E), storage dtype
        xp = x + pos_ref[...]                        # q = k = x + pos ; v = x
        qk = jnp.dot(xp, wqk_ref[...], preferred_element_type=jnp.float32) + bqk_ref[...]
        v = jnp.dot(x, wv_ref[...], preferred_element_type=jnp.float32) + bv_ref[...]
        q_scr[...] = qk[:, :E].astype(q_scr.dtype)
        k_scr[...] = qk[:, E:].astype(k_scr.dtype)
        v_scr[...] = v.astype(v_scr.dtype)

    # ---- Stage 2: attention for this query tile (all heads), single fused out-projection ----
    q0 = pl.multiple_of(qi * tq, tq)
    q = q_scr[pl.ds(q0, tq), :]                      # (tq, E)
    k = k_scr[...]                                   # (L, E), resident across query tiles
    v = v_scr[...]                                   # (L, E)

    for h in range(n_head):                          # static unroll; head outputs go to VMEM scratch
        sl = slice(h * hd, (h + 1) * hd)
        s = lax.dot_general(q[:, sl], k[:, sl], (((1,), (1,)), ((), ())),
                            preferred_element_type=jnp.float32) * scale     # (tq, L)
        m = jnp.max(s, axis=-1, keepdims=True)
        p = jnp.exp(s - m)
        p = p / jnp.sum(p, axis=-1, keepdims=True)   # exact softmax (parity with torch)
        ah = jnp.dot(p.astype(v.dtype), v[:, sl], preferred_element_type=jnp.float32)
        attn_scr[:, sl] = ah.astype(attn_scr.dtype)  # concatenate heads in VMEM

    # one (tq, E) @ (E, E) output projection on the MXU (full-K contraction)
    y = jnp.dot(attn_scr[...], wo_ref[...], preferred_element_type=jnp.float32)
    y = y + bo_ref[...] + x_ref[pl.ds(q0, tq), :].astype(jnp.float32)        # residual
    o_ref[...] = _ln_f32(y, g_ref[...], b_ref[...], eps).astype(o_ref.dtype)  # norm1


def fused_self_attn_block(x, pos, ap, norm_g, norm_b, n_head, *, eps=1e-5, tq_cap=256):
    """x, pos: (B, L, E) -> LayerNorm(x + MHA(x+pos, x+pos, x) @ Wo + bo)."""
    B, L, E = x.shape
    assert E % n_head == 0
    tq = _pick_tile(L, tq_cap)
    scale = 1.0 / math.sqrt(E // n_head)
    E2 = ap["wqk_t"].shape[1]                        # 2*E (fused Wq|Wk)

    full_spec = pl.BlockSpec((None, L, E), lambda b, qi: (b, 0, 0))
    out_spec = pl.BlockSpec((None, tq, E), lambda b, qi: (b, qi, 0))
    cmap = lambda b, qi: (0, 0)

    return pl.pallas_call(
        functools.partial(_self_attn_kernel, n_head=n_head, scale=scale, eps=eps, tq=tq),
        out_shape=jax.ShapeDtypeStruct((B, L, E), x.dtype),
        grid=(B, L // tq),
        in_specs=[full_spec, full_spec,
                  _const_spec((E, E2), cmap), _const_spec((1, E2), cmap),
                  _const_spec((E, E), cmap), _const_spec((1, E), cmap),
                  _const_spec((E, E), cmap), _const_spec((1, E), cmap),
                  _const_spec((1, E), cmap), _const_spec((1, E), cmap)],
        out_specs=out_spec,
        scratch_shapes=[pltpu.VMEM((L, E), x.dtype),     # Q (full sequence, resident per batch)
                        pltpu.VMEM((L, E), x.dtype),     # K
                        pltpu.VMEM((L, E), x.dtype),     # V
                        pltpu.VMEM((tq, E), x.dtype)],   # concatenated head outputs
        compiler_params=pltpu.CompilerParams(
            dimension_semantics=("parallel", "arbitrary"),
            vmem_limit_bytes=_VMEM_LIMIT_BYTES),
    )(x, pos, ap["wqk_t"], ap["bqk"], ap["wv_t"], ap["bv"],
      ap["wo_t"], ap["bo"], norm_g, norm_b)


# ---------------------------------------------------------------------------
# Kernel 2: fused FFN  ([pre-LN prologue] + lin1 + ReLU + lin2 + residual [+ post-LN])
#   The (tile_M, FF) intermediate never leaves VMEM/vregs.
#   Encoder: post_ln=True (norm2 after residual).  Decoder: pre_ln=True with prescale=2
#   (reproduces `tgt = norm2(tgt + tgt)`), no post-LN (no norm3 in the reference).
# ---------------------------------------------------------------------------

def _ffn_kernel(x_ref, w1_ref, b1_ref, w2_ref, b2_ref, g_ref, b_ref, o_ref,
                *, eps, prescale, pre_ln, post_ln):
    x = x_ref[...].astype(jnp.float32)                                        # (tm, E)
    if pre_ln:
        x = _ln_f32(x * prescale, g_ref[...], b_ref[...], eps)
    h = jnp.dot(x.astype(w1_ref.dtype), w1_ref[...],
                preferred_element_type=jnp.float32) + b1_ref[...]
    h = jnp.maximum(h, 0.0)
    y = x + jnp.dot(h.astype(w2_ref.dtype), w2_ref[...],
                    preferred_element_type=jnp.float32) + b2_ref[...]
    if post_ln:
        y = _ln_f32(y, g_ref[...], b_ref[...], eps)
    o_ref[...] = y.astype(o_ref.dtype)


def fused_ffn(x, p, *, pre_ln, post_ln, prescale=1.0, eps=1e-5):
    B, L, E = x.shape
    FF = p["lin1_w_t"].shape[1]
    M = B * L
    # Cap the row tile so the (tm, FF) f32 intermediate stays comfortably within VMEM (v7x: 64 MiB).
    tm_cap = max(8, min(512, (4 * 1024 * 1024) // max(FF * 4, 1)))
    tm = _pick_tile(M, tm_cap)
    x2 = x.reshape(M, E)
    tok_spec = pl.BlockSpec((tm, E), lambda i: (i, 0))
    cmap = lambda i: (0, 0)
    out = pl.pallas_call(
        functools.partial(_ffn_kernel, eps=eps, prescale=prescale,
                          pre_ln=pre_ln, post_ln=post_ln),
        out_shape=jax.ShapeDtypeStruct((M, E), x.dtype),
        grid=(M // tm,),
        in_specs=[tok_spec,
                  _const_spec((E, FF), cmap), _const_spec((1, FF), cmap),
                  _const_spec((FF, E), cmap), _const_spec((1, E), cmap),
                  _const_spec((1, E), cmap), _const_spec((1, E), cmap)],
        out_specs=tok_spec,
        compiler_params=pltpu.CompilerParams(
            dimension_semantics=("parallel",),
            vmem_limit_bytes=_VMEM_LIMIT_BYTES),
    )(x2, p["lin1_w_t"], p["lin1_b"], p["lin2_w_t"], p["lin2_b"],
      p["norm2_g"], p["norm2_b"])
    return out.reshape(B, L, E)


# ---------------------------------------------------------------------------
# Kernel 3: standalone LayerNorm (final decoder norm only)
# ---------------------------------------------------------------------------

def _ln_kernel(x_ref, g_ref, b_ref, o_ref, *, eps):
    x = x_ref[...].astype(jnp.float32)
    o_ref[...] = _ln_f32(x, g_ref[...], b_ref[...], eps).astype(o_ref.dtype)


def layernorm(x, gamma, beta, *, eps=1e-5):
    shp = x.shape
    E = shp[-1]
    x2 = x.reshape(-1, E)
    M = x2.shape[0]
    tm = _pick_tile(M, 512)                      # pure bandwidth: large row tiles
    tok_spec = pl.BlockSpec((tm, E), lambda i: (i, 0))
    cmap = lambda i: (0, 0)
    out = pl.pallas_call(
        functools.partial(_ln_kernel, eps=eps),
        out_shape=jax.ShapeDtypeStruct((M, E), x.dtype),
        grid=(M // tm,),
        in_specs=[tok_spec, _const_spec((1, E), cmap), _const_spec((1, E), cmap)],
        out_specs=tok_spec,
        compiler_params=pltpu.CompilerParams(dimension_semantics=("parallel",)),
    )(x2, gamma, beta)
    return out.reshape(shp)


# ---------------------------------------------------------------------------
# Encoder / decoder layers and full transformer forward (batch-first internally)
# ---------------------------------------------------------------------------

def encoder_layer_fwd(src, pos, p, n_head):
    # self-attn (+pos-add, QKV proj, out-proj, residual, norm1) fused in one kernel
    src = fused_self_attn_block(src, pos, p["self_attn"], p["norm1_g"], p["norm1_b"], n_head)
    # FFN + residual + norm2 fused in one kernel
    src = fused_ffn(src, p, pre_ln=False, post_ln=True)
    return src


def decoder_layer_fwd(tgt, memory, pos, query_pos, p, n_head):
    # self-attn (+query-pos add, QKV proj, out-proj, residual, norm1) fused in one kernel
    tgt = fused_self_attn_block(tgt, query_pos, p["self_attn"], p["norm1_g"], p["norm1_b"], n_head)
    # Reference bug: `tgt = tgt + self.dropout2(tgt)` adds tgt (NOT the cross-attention output), so
    # the mh_attn block is dead compute -> skipped (numerically identical); `memory`/`pos` unused.
    _ = (memory, pos)
    # norm2(2*tgt) fused as pre-LN prologue of the FFN; no norm3 after the FFN in the reference.
    tgt = fused_ffn(tgt, p, pre_ln=True, post_ln=False, prescale=2.0)
    return tgt


def transformer_forward(params, src, query_embed, pos_embed, n_head, num_enc, num_dec,
                        compute_dtype=jnp.bfloat16):
    bs, c, h, w = src.shape
    S = h * w
    # batch-first internal layout (B, L, E); bf16 storage, f32 accumulation inside kernels
    src_bf = src.reshape(bs, c, S).transpose(0, 2, 1).astype(compute_dtype)        # (B, S, C)
    pos_bf = pos_embed.reshape(bs, c, S).transpose(0, 2, 1).astype(compute_dtype)  # (B, S, C)
    nq = query_embed.shape[0]
    qpos_bf = jnp.broadcast_to(query_embed.astype(compute_dtype)[None, :, :], (bs, nq, c))
    tgt = jnp.zeros((bs, nq, c), compute_dtype)

    memory = src_bf
    for _ in range(num_enc):
        memory = encoder_layer_fwd(memory, pos_bf, params["enc"], n_head)

    out = tgt
    for _ in range(num_dec):
        out = decoder_layer_fwd(out, memory, None, qpos_bf, params["dec"], n_head)
    hs = layernorm(out, params["dec_norm_g"], params["dec_norm_b"])

    # torch: hs is (NQ, B, C); hs.transpose(1, 2) -> (NQ, C, B)
    hs_out = jnp.transpose(hs, (1, 2, 0)).astype(jnp.float32)                        # (NQ, C, B)
    # torch: memory (S, B, C).permute(1, 2, 0).view(bs, c, h, w)
    mem_out = jnp.transpose(memory, (0, 2, 1)).reshape(bs, c, h, w).astype(jnp.float32)
    return hs_out, mem_out


# ---------------------------------------------------------------------------
# Deterministic parameter init (PyTorch shapes, pre-laid-out and pre-cast for the kernels)
# ---------------------------------------------------------------------------

def init_params(key, D, FF, dtype=jnp.bfloat16):
    def mha(k):
        ks = jax.random.split(k, 4)
        in_w = 0.05 * jax.random.normal(ks[0], (3 * D, D), jnp.float32)
        in_b = 0.05 * jax.random.normal(ks[1], (3 * D,), jnp.float32)
        out_w = 0.05 * jax.random.normal(ks[2], (D, D), jnp.float32)
        out_b = 0.05 * jax.random.normal(ks[3], (D,), jnp.float32)
        wq_t, wk_t, wv_t = in_w[:D].T, in_w[D:2 * D].T, in_w[2 * D:].T
        return {
            "wqk_t": jnp.concatenate([wq_t, wk_t], axis=1).astype(dtype),   # (D, 2D) fused Wq|Wk
            "bqk": in_b[:2 * D].reshape(1, 2 * D),                          # f32 biases
            "wv_t": wv_t.astype(dtype),                                     # (D, D)
            "bv": in_b[2 * D:].reshape(1, D),
            "wo_t": out_w.T.astype(dtype),                                  # (D, D)
            "bo": out_b.reshape(1, D),
        }

    def layer(k):
        ks = jax.random.split(k, 5)
        lin1_w = 0.05 * jax.random.normal(ks[1], (FF, D), jnp.float32)
        lin2_w = 0.05 * jax.random.normal(ks[3], (D, FF), jnp.float32)
        return {
            "self_attn": mha(ks[0]),
            "lin1_w_t": lin1_w.T.astype(dtype),                             # (D, FF)
            "lin1_b": 0.05 * jax.random.normal(ks[2], (1, FF), jnp.float32),
            "lin2_w_t": lin2_w.T.astype(dtype),                             # (FF, D)
            "lin2_b": 0.05 * jax.random.normal(ks[4], (1, D), jnp.float32),
            "norm1_g": jnp.ones((1, D), jnp.float32), "norm1_b": jnp.zeros((1, D), jnp.float32),
            "norm2_g": jnp.ones((1, D), jnp.float32), "norm2_b": jnp.zeros((1, D), jnp.float32),
        }

    k_enc, k_dec = jax.random.split(key, 2)
    # clone_layer deep-copies one layer -> all layers in a stack share initial params; mirrored here.
    return {"enc": layer(k_enc), "dec": layer(k_dec),
            "dec_norm_g": jnp.ones((1, D), jnp.float32),
            "dec_norm_b": jnp.zeros((1, D), jnp.float32)}


# ---------------------------------------------------------------------------
# Main
# ---------------------------------------------------------------------------

if __name__ == "__main__":
    B, H, W = 2, 4, 4
    D, NH, FF = 32, 4, 64          # d_model, nhead, dim_feedforward (scaled down)
    NEL, NDL = 2, 2                # num encoder / decoder layers (scaled down)
    NQ = 8                         # number of object queries
    C = D                          # src channels must equal d_model

    key = jax.random.PRNGKey(0)
    k_src, k_qe, k_pe, k_p = jax.random.split(key, 4)
    src = jax.random.normal(k_src, (B, C, H, W), jnp.float32)
    query_embed = jax.random.normal(k_qe, (NQ, D), jnp.float32)
    pos_embed = jax.random.normal(k_pe, (B, C, H, W), jnp.float32)
    params = init_params(k_p, D, FF, dtype=jnp.bfloat16)

    fwd = jax.jit(functools.partial(transformer_forward,
                                    n_head=NH, num_enc=NEL, num_dec=NDL))
    hs, memory = fwd(params, src, query_embed, pos_embed)
    jax.block_until_ready((hs, memory))

    assert hs.shape == (NQ, D, B), hs.shape
    assert memory.shape == (B, C, H, W), memory.shape
    assert bool(jnp.all(jnp.isfinite(hs))) and bool(jnp.all(jnp.isfinite(memory)))
    print("KERNEL_OK")
</pallas_src>

<mosaic_0001>
module attributes {stable_mosaic.version = 11 : i64} {
  func.func @_ffn_kernel(%arg0: i32, %arg1: memref<32x32xbf16, #tpu.memory_space<vmem>>, %arg2: memref<32x64xbf16, #tpu.memory_space<vmem>>, %arg3: memref<1x64xf32, #tpu.memory_space<vmem>>, %arg4: memref<64x32xbf16, #tpu.memory_space<vmem>>, %arg5: memref<1x32xf32, #tpu.memory_space<vmem>>, %arg6: memref<1x32xf32, #tpu.memory_space<vmem>>, %arg7: memref<1x32xf32, #tpu.memory_space<vmem>>, %arg8: memref<32x32xbf16, #tpu.memory_space<vmem>>) attributes {dimension_semantics = [#tpu.dimension_semantics<parallel>], iteration_bounds = array<i64: 1>, scalar_prefetch = 0 : i64, scratch_operands = 0 : i64, tpu.core_type = #tpu.core_type<tc>, window_params = [{transform_indices = @transform_0, window_bounds = array<i64: 32, 32>}, {pipeline_mode = #tpu.pipeline_mode<synchronous>, transform_indices = @transform_1, window_bounds = array<i64: 32, 64>}, {pipeline_mode = #tpu.pipeline_mode<synchronous>, transform_indices = @transform_2, window_bounds = array<i64: 1, 64>}, {pipeline_mode = #tpu.pipeline_mode<synchronous>, transform_indices = @transform_3, window_bounds = array<i64: 64, 32>}, {pipeline_mode = #tpu.pipeline_mode<synchronous>, transform_indices = @transform_4, window_bounds = array<i64: 1, 32>}, {pipeline_mode = #tpu.pipeline_mode<synchronous>, transform_indices = @transform_5, window_bounds = array<i64: 1, 32>}, {pipeline_mode = #tpu.pipeline_mode<synchronous>, transform_indices = @transform_6, window_bounds = array<i64: 1, 32>}, {transform_indices = @transform_7, window_bounds = array<i64: 32, 32>}]} {
    %c0 = arith.constant 0 : index
    %c0_0 = arith.constant 0 : index
    %0 = vector.load %arg1[%c0, %c0_0] : memref<32x32xbf16, #tpu.memory_space<vmem>>, vector<32x32xbf16>
    %1 = arith.extf %0 : vector<32x32xbf16> to vector<32x32xf32>
    %2 = arith.truncf %1 : vector<32x32xf32> to vector<32x32xbf16>
    %c0_1 = arith.constant 0 : index
    %c0_2 = arith.constant 0 : index
    %3 = vector.load %arg2[%c0_1, %c0_2] : memref<32x64xbf16, #tpu.memory_space<vmem>>, vector<32x64xbf16>
    %cst = arith.constant dense<0.000000e+00> : vector<32x64xf32>
    %4 = tpu.matmul %2, %3, %cst {dimension_numbers = #tpu.dot_dimension_numbers<[1], [0], [0], [1], [0, 0, 1, 1], [], []>} : vector<32x32xbf16>, vector<32x64xbf16>, vector<32x64xf32> -> vector<32x64xf32>
    %c0_3 = arith.constant 0 : index
    %c0_4 = arith.constant 0 : index
    %5 = vector.load %arg3[%c0_3, %c0_4] : memref<1x64xf32, #tpu.memory_space<vmem>>, vector<1x64xf32>
    %6 = vector.broadcast %5 : vector<1x64xf32> to vector<32x64xf32>
    %7 = arith.addf %4, %6 : vector<32x64xf32>
    %cst_5 = arith.constant 0.000000e+00 : f32
    %8 = vector.broadcast %cst_5 : f32 to vector<32x64xf32>
    %9 = arith.maximumf %7, %8 : vector<32x64xf32>
    %10 = arith.truncf %9 : vector<32x64xf32> to vector<32x64xbf16>
    %c0_6 = arith.constant 0 : index
    %c0_7 = arith.constant 0 : index
    %11 = vector.load %arg4[%c0_6, %c0_7] : memref<64x32xbf16, #tpu.memory_space<vmem>>, vector<64x32xbf16>
    %cst_8 = arith.constant dense<0.000000e+00> : vector<32x32xf32>
    %12 = tpu.matmul %10, %11, %cst_8 {dimension_numbers = #tpu.dot_dimension_numbers<[1], [0], [0], [1], [0, 0, 1, 1], [], []>} : vector<32x64xbf16>, vector<64x32xbf16>, vector<32x32xf32> -> vector<32x32xf32>
    %13 = arith.addf %1, %12 : vector<32x32xf32>
    %c0_9 = arith.constant 0 : index
    %c0_10 = arith.constant 0 : index
    %14 = vector.load %arg5[%c0_9, %c0_10] : memref<1x32xf32, #tpu.memory_space<vmem>>, vector<1x32xf32>
    %15 = vector.broadcast %14 : vector<1x32xf32> to vector<32x32xf32>
    %16 = arith.addf %13, %15 : vector<32x32xf32>
    %c0_11 = arith.constant 0 : index
    %c0_12 = arith.constant 0 : index
    %17 = vector.load %arg6[%c0_11, %c0_12] : memref<1x32xf32, #tpu.memory_space<vmem>>, vector<1x32xf32>
    %c0_13 = arith.constant 0 : index
    %c0_14 = arith.constant 0 : index
    %18 = vector.load %arg7[%c0_13, %c0_14] : memref<1x32xf32, #tpu.memory_space<vmem>>, vector<1x32xf32>
    %cst_15 = arith.constant dense<0.000000e+00> : vector<32xf32>
    %19 = vector.multi_reduction <add>, %16, %cst_15 [1] : vector<32x32xf32> to vector<32xf32>
    %20 = vector.shape_cast %19 : vector<32xf32> to vector<32x1xf32>
    %cst_16 = arith.constant 3.200000e+01 : f32
    %21 = vector.broadcast %cst_16 : f32 to vector<32x1xf32>
    %22 = arith.divf %20, %21 : vector<32x1xf32>
    %23 = vector.broadcast %22 : vector<32x1xf32> to vector<32x32xf32>
    %24 = arith.subf %16, %23 : vector<32x32xf32>
    %25 = arith.mulf %24, %24 : vector<32x32xf32>
    %cst_17 = arith.constant dense<0.000000e+00> : vector<32xf32>
    %26 = vector.multi_reduction <add>, %25, %cst_17 [1] : vector<32x32xf32> to vector<32xf32>
    %27 = vector.shape_cast %26 : vector<32xf32> to vector<32x1xf32>
    %cst_18 = arith.constant 3.200000e+01 : f32
    %28 = vector.broadcast %cst_18 : f32 to vector<32x1xf32>
    %29 = arith.divf %27, %28 : vector<32x1xf32>
    %30 = vector.broadcast %22 : vector<32x1xf32> to vector<32x32xf32>
    %31 = arith.subf %16, %30 : vector<32x32xf32>
    %cst_19 = arith.constant 9.99999974E-6 : f32
    %32 = vector.broadcast %cst_19 : f32 to vector<32x1xf32>
    %33 = arith.addf %29, %32 : vector<32x1xf32>
    %34 = math.rsqrt %33 : vector<32x1xf32>
    %35 = vector.broadcast %34 : vector<32x1xf32> to vector<32x32xf32>
    %36 = arith.mulf %31, %35 : vector<32x32xf32>
    %37 = vector.broadcast %17 : vector<1x32xf32> to vector<32x32xf32>
    %38 = arith.mulf %36, %37 : vector<32x32xf32>
    %39 = vector.broadcast %18 : vector<1x32xf32> to vector<32x32xf32>
    %40 = arith.addf %38, %39 : vector<32x32xf32>
    %41 = arith.truncf %40 : vector<32x32xf32> to vector<32x32xbf16>
    %c0_20 = arith.constant 0 : index
    %c0_21 = arith.constant 0 : index
    %42 = vector.load %arg8[%c0_20, %c0_21] : memref<32x32xbf16, #tpu.memory_space<vmem>>, vector<32x32xbf16>
    tpu.vector_store %arg8[%c0_20, %c0_21], %41 {strides = array<i32>} : memref<32x32xbf16, #tpu.memory_space<vmem>>, vector<32x32xbf16>,
    return
  }
  func.func @transform_0(%arg0: i32) -> (i32, i32) {
    %c0_i32 = arith.constant 0 : i32
    %c0_i32_0 = arith.constant 0 : i32
    return %arg0, %c0_i32 : i32, i32
  }
  func.func @transform_1(%arg0: i32) -> (i32, i32) {
    %c0_i32 = arith.constant 0 : i32
    %c0_i32_0 = arith.constant 0 : i32
    %c0_i32_1 = arith.constant 0 : i32
    return %c0_i32, %c0_i32_0 : i32, i32
  }
  func.func @transform_2(%arg0: i32) -> (i32, i32) {
    %c0_i32 = arith.constant 0 : i32
    %c0_i32_0 = arith.constant 0 : i32
    %c0_i32_1 = arith.constant 0 : i32
    return %c0_i32, %c0_i32_0 : i32, i32
  }
  func.func @transform_3(%arg0: i32) -> (i32, i32) {
    %c0_i32 = arith.constant 0 : i32
    %c0_i32_0 = arith.constant 0 : i32
    %c0_i32_1 = arith.constant 0 : i32
    return %c0_i32, %c0_i32_0 : i32, i32
  }
  func.func @transform_4(%arg0: i32) -> (i32, i32) {
    %c0_i32 = arith.constant 0 : i32
    %c0_i32_0 = arith.constant 0 : i32
    %c0_i32_1 = arith.constant 0 : i32
    return %c0_i32, %c0_i32_0 : i32, i32
  }
  func.func @transform_5(%arg0: i32) -> (i32, i32) {
    %c0_i32 = arith.constant 0 : i32
    %c0_i32_0 = arith.constant 0 : i32
    %c0_i32_1 = arith.constant 0 : i32
    return %c0_i32, %c0_i32_0 : i32, i32
  }
  func.func @transform_6(%arg0: i32) -> (i32, i32) {
    %c0_i32 = arith.constant 0 : i32
    %c0_i32_0 = arith.constant 0 : i32
    %c0_i32_1 = arith.constant 0 : i32
    return %c0_i32, %c0_i32_0 : i32, i32
  }
  func.func @transform_7(%arg0: i32) -> (i32, i32) {
    %c0_i32 = arith.constant 0 : i32
    %c0_i32_0 = arith.constant 0 : i32
    return %arg0, %c0_i32 : i32, i32
  }
}

module attributes {stable_mosaic.version = 11 : i64} {
  func.func @_self_attn_kernel(%arg0: i32, %arg1: i32, %arg2: memref<1x16x32xbf16, #tpu.memory_space<vmem>>, %arg3: memref<1x16x32xbf16, #tpu.memory_space<vmem>>, %arg4: memref<32x64xbf16, #tpu.memory_space<vmem>>, %arg5: memref<1x64xf32, #tpu.memory_space<vmem>>, %arg6: memref<32x32xbf16, #tpu.memory_space<vmem>>, %arg7: memref<1x32xf32, #tpu.memory_space<vmem>>, %arg8: memref<32x32xbf16, #tpu.memory_space<vmem>>, %arg9: memref<1x32xf32, #tpu.memory_space<vmem>>, %arg10: memref<1x32xf32, #tpu.memory_space<vmem>>, %arg11: memref<1x32xf32, #tpu.memory_space<vmem>>, %arg12: memref<1x16x32xbf16, #tpu.memory_space<vmem>>, %arg13: memref<16x32xbf16, #tpu.memory_space<vmem>>, %arg14: memref<16x32xbf16, #tpu.memory_space<vmem>>, %arg15: memref<16x32xbf16, #tpu.memory_space<vmem>>, %arg16: memref<16x32xbf16, #tpu.memory_space<vmem>>) attributes {dimension_semantics = [#tpu.dimension_semantics<parallel>, #tpu.dimension_semantics<arbitrary>], iteration_bounds = array<i64: 2, 1>, scalar_prefetch = 0 : i64, scratch_operands = 4 : i64, tpu.core_type = #tpu.core_type<tc>, window_params = [{transform_indices = @transform_0, window_bounds = array<i64: 1, 16, 32>}, {transform_indices = @transform_1, window_bounds = array<i64: 1, 16, 32>}, {pipeline_mode = #tpu.pipeline_mode<synchronous>, transform_indices = @transform_2, window_bounds = array<i64: 32, 64>}, {pipeline_mode = #tpu.pipeline_mode<synchronous>, transform_indices = @transform_3, window_bounds = array<i64: 1, 64>}, {pipeline_mode = #tpu.pipeline_mode<synchronous>, transform_indices = @transform_4, window_bounds = array<i64: 32, 32>}, {pipeline_mode = #tpu.pipeline_mode<synchronous>, transform_indices = @transform_5, window_bounds = array<i64: 1, 32>}, {pipeline_mode = #tpu.pipeline_mode<synchronous>, transform_indices = @transform_6, window_bounds = array<i64: 32, 32>}, {pipeline_mode = #tpu.pipeline_mode<synchronous>, transform_indices = @transform_7, window_bounds = array<i64: 1, 32>}, {pipeline_mode = #tpu.pipeline_mode<synchronous>, transform_indices = @transform_8, window_bounds = array<i64: 1, 32>}, {pipeline_mode = #tpu.pipeline_mode<synchronous>, transform_indices = @transform_9, window_bounds = array<i64: 1, 32>}, {transform_indices = @transform_10, window_bounds = array<i64: 1, 16, 32>}]} {
    %c0_i32 = arith.constant 0 : i32
    %0 = arith.cmpi eq, %arg1, %c0_i32 : i32
    %1 = arith.extui %0 : i1 to i32
    %c0_i32_0 = arith.constant 0 : i32
    %2 = arith.cmpi ne, %1, %c0_i32_0 : i32
    scf.if %2 {
      %c0_50 = arith.constant 0 : index
      %c0_51 = arith.constant 0 : index
      %c0_52 = arith.constant 0 : index
      %124 = vector.load %arg2[%c0_50, %c0_51, %c0_52] : memref<1x16x32xbf16, #tpu.memory_space<vmem>>, vector<1x16x32xbf16>
      %125 = vector.shape_cast %124 : vector<1x16x32xbf16> to vector<16x32xbf16>
      %c0_53 = arith.constant 0 : index
      %c0_54 = arith.constant 0 : index
      %c0_55 = arith.constant 0 : index
      %126 = vector.load %arg3[%c0_53, %c0_54, %c0_55] : memref<1x16x32xbf16, #tpu.memory_space<vmem>>, vector<1x16x32xbf16>
      %127 = vector.shape_cast %126 : vector<1x16x32xbf16> to vector<16x32xbf16>
      %128 = arith.addf %125, %127 : vector<16x32xbf16>
      %c0_56 = arith.constant 0 : index
      %c0_57 = arith.constant 0 : index
      %129 = vector.load %arg4[%c0_56, %c0_57] : memref<32x64xbf16, #tpu.memory_space<vmem>>, vector<32x64xbf16>
      %cst_58 = arith.constant dense<0.000000e+00> : vector<16x64xf32>
      %130 = tpu.matmul %128, %129, %cst_58 {dimension_numbers = #tpu.dot_dimension_numbers<[1], [0], [0], [1], [0, 0, 1, 1], [], []>} : vector<16x32xbf16>, vector<32x64xbf16>, vector<16x64xf32> -> vector<16x64xf32>
      %c0_59 = arith.constant 0 : index
      %c0_60 = arith.constant 0 : index
      %131 = vector.load %arg5[%c0_59, %c0_60] : memref<1x64xf32, #tpu.memory_space<vmem>>, vector<1x64xf32>
      %132 = vector.broadcast %131 : vector<1x64xf32> to vector<16x64xf32>
      %133 = arith.addf %130, %132 : vector<16x64xf32>
      %c0_61 = arith.constant 0 : index
      %c0_62 = arith.constant 0 : index
      %134 = vector.load %arg6[%c0_61, %c0_62] : memref<32x32xbf16, #tpu.memory_space<vmem>>, vector<32x32xbf16>
      %cst_63 = arith.constant dense<0.000000e+00> : vector<16x32xf32>
      %135 = tpu.matmul %125, %134, %cst_63 {dimension_numbers = #tpu.dot_dimension_numbers<[1], [0], [0], [1], [0, 0, 1, 1], [], []>} : vector<16x32xbf16>, vector<32x32xbf16>, vector<16x32xf32> -> vector<16x32xf32>
      %c0_64 = arith.constant 0 : index
      %c0_65 = arith.constant 0 : index
      %136 = vector.load %arg7[%c0_64, %c0_65] : memref<1x32xf32, #tpu.memory_space<vmem>>, vector<1x32xf32>
      %137 = vector.broadcast %136 : vector<1x32xf32> to vector<16x32xf32>
      %138 = arith.addf %135, %137 : vector<16x32xf32>
      %139 = vector.extract_strided_slice %133 {offsets = [0, 0], sizes = [16, 32], strides = [1, 1]} : vector<16x64xf32> to vector<16x32xf32>
      %140 = arith.truncf %139 : vector<16x32xf32> to vector<16x32xbf16>
      %c0_66 = arith.constant 0 : index
      %c0_67 = arith.constant 0 : index
      %141 = vector.load %arg13[%c0_66, %c0_67] : memref<16x32xbf16, #tpu.memory_space<vmem>>, vector<16x32xbf16>
      tpu.vector_store %arg13[%c0_66, %c0_67], %140 {strides = array<i32>} : memref<16x32xbf16, #tpu.memory_space<vmem>>, vector<16x32xbf16>,
      %142 = vector.extract_strided_slice %133 {offsets = [0, 32], sizes = [16, 32], strides = [1, 1]} : vector<16x64xf32> to vector<16x32xf32>
      %143 = arith.truncf %142 : vector<16x32xf32> to vector<16x32xbf16>
      %c0_68 = arith.constant 0 : index
      %c0_69 = arith.constant 0 : index
      %144 = vector.load %arg14[%c0_68, %c0_69] : memref<16x32xbf16, #tpu.memory_space<vmem>>, vector<16x32xbf16>
      tpu.vector_store %arg14[%c0_68, %c0_69], %143 {strides = array<i32>} : memref<16x32xbf16, #tpu.memory_space<vmem>>, vector<16x32xbf16>,
      %145 = arith.truncf %138 : vector<16x32xf32> to vector<16x32xbf16>
      %c0_70 = arith.constant 0 : index
      %c0_71 = arith.constant 0 : index
      %146 = vector.load %arg15[%c0_70, %c0_71] : memref<16x32xbf16, #tpu.memory_space<vmem>>, vector<16x32xbf16>
      tpu.vector_store %arg15[%c0_70, %c0_71], %145 {strides = array<i32>} : memref<16x32xbf16, #tpu.memory_space<vmem>>, vector<16x32xbf16>,
    } else {
    }
    %c16_i32 = arith.constant 16 : i32
    %3 = arith.muli %arg1, %c16_i32 : i32
    %4 = tpu.assume_multiple %3, 16 : i32
    %5 = arith.index_cast %4 : i32 to index
    %c0 = arith.constant 0 : index
    %6 = vector.load %arg13[%5, %c0] : memref<16x32xbf16, #tpu.memory_space<vmem>>, vector<16x32xbf16>
    %c0_1 = arith.constant 0 : index
    %c0_2 = arith.constant 0 : index
    %7 = vector.load %arg14[%c0_1, %c0_2] : memref<16x32xbf16, #tpu.memory_space<vmem>>, vector<16x32xbf16>
    %c0_3 = arith.constant 0 : index
    %c0_4 = arith.constant 0 : index
    %8 = vector.load %arg15[%c0_3, %c0_4] : memref<16x32xbf16, #tpu.memory_space<vmem>>, vector<16x32xbf16>
    %9 = vector.extract_strided_slice %6 {offsets = [0, 0], sizes = [16, 8], strides = [1, 1]} : vector<16x32xbf16> to vector<16x8xbf16>
    %10 = vector.extract_strided_slice %7 {offsets = [0, 0], sizes = [16, 8], strides = [1, 1]} : vector<16x32xbf16> to vector<16x8xbf16>
    %cst = arith.constant dense<0.000000e+00> : vector<16x16xf32>
    %11 = tpu.matmul %9, %10, %cst {dimension_numbers = #tpu.dot_dimension_numbers<[1], [1], [0], [0], [0, 0, 1, 0], [], []>} : vector<16x8xbf16>, vector<16x8xbf16>, vector<16x16xf32> -> vector<16x16xf32>
    %cst_5 = arith.constant 0.353553385 : f32
    %12 = vector.broadcast %cst_5 : f32 to vector<16x16xf32>
    %13 = arith.mulf %11, %12 : vector<16x16xf32>
    %cst_6 = arith.constant dense<0xFF800000> : vector<16xf32>
    %14 = vector.multi_reduction <maximumf>, %13, %cst_6 [1] : vector<16x16xf32> to vector<16xf32>
    %15 = vector.shape_cast %14 : vector<16xf32> to vector<16x1xf32>
    %16 = vector.broadcast %15 : vector<16x1xf32> to vector<16x16xf32>
    %17 = arith.subf %13, %16 : vector<16x16xf32>
    %18 = math.exp %17 : vector<16x16xf32>
    %cst_7 = arith.constant dense<0.000000e+00> : vector<16xf32>
    %19 = vector.multi_reduction <add>, %18, %cst_7 [1] : vector<16x16xf32> to vector<16xf32>
    %20 = vector.shape_cast %19 : vector<16xf32> to vector<16x1xf32>
    %21 = vector.broadcast %20 : vector<16x1xf32> to vector<16x16xf32>
    %22 = arith.divf %18, %21 : vector<16x16xf32>
    %23 = arith.truncf %22 : vector<16x16xf32> to vector<16x16xbf16>
    %24 = vector.extract_strided_slice %8 {offsets = [0, 0], sizes = [16, 8], strides = [1, 1]} : vector<16x32xbf16> to vector<16x8xbf16>
    %cst_8 = arith.constant dense<0.000000e+00> : vector<16x8xf32>
    %25 = tpu.matmul %23, %24, %cst_8 {dimension_numbers = #tpu.dot_dimension_numbers<[1], [0], [0], [1], [0, 0, 1, 1], [], []>} : vector<16x16xbf16>, vector<16x8xbf16>, vector<16x8xf32> -> vector<16x8xf32>
    %26 = arith.truncf %25 : vector<16x8xf32> to vector<16x8xbf16>
    %c0_9 = arith.constant 0 : index
    %c0_10 = arith.constant 0 : index
    %27 = vector.load %arg16[%c0_9, %c0_10] : memref<16x32xbf16, #tpu.memory_space<vmem>>, vector<16x8xbf16>
    tpu.vector_store %arg16[%c0_9, %c0_10], %26 {strides = array<i32>} : memref<16x32xbf16, #tpu.memory_space<vmem>>, vector<16x8xbf16>,
    %28 = vector.extract_strided_slice %6 {offsets = [0, 8], sizes = [16, 8], strides = [1, 1]} : vector<16x32xbf16> to vector<16x8xbf16>
    %29 = vector.extract_strided_slice %7 {offsets = [0, 8], sizes = [16, 8], strides = [1, 1]} : vector<16x32xbf16> to vector<16x8xbf16>
    %cst_11 = arith.constant dense<0.000000e+00> : vector<16x16xf32>
    %30 = tpu.matmul %28, %29, %cst_11 {dimension_numbers = #tpu.dot_dimension_numbers<[1], [1], [0], [0], [0, 0, 1, 0], [], []>} : vector<16x8xbf16>, vector<16x8xbf16>, vector<16x16xf32> -> vector<16x16xf32>
    %cst_12 = arith.constant 0.353553385 : f32
    %31 = vector.broadcast %cst_12 : f32 to vector<16x16xf32>
    %32 = arith.mulf %30, %31 : vector<16x16xf32>
    %cst_13 = arith.constant dense<0xFF800000> : vector<16xf32>
    %33 = vector.multi_reduction <maximumf>, %32, %cst_13 [1] : vector<16x16xf32> to vector<16xf32>
    %34 = vector.shape_cast %33 : vector<16xf32> to vector<16x1xf32>
    %35 = vector.broadcast %34 : vector<16x1xf32> to vector<16x16xf32>
    %36 = arith.subf %32, %35 : vector<16x16xf32>
    %37 = math.exp %36 : vector<16x16xf32>
    %cst_14 = arith.constant dense<0.000000e+00> : vector<16xf32>
    %38 = vector.multi_reduction <add>, %37, %cst_14 [1] : vector<16x16xf32> to vector<16xf32>
    %39 = vector.shape_cast %38 : vector<16xf32> to vector<16x1xf32>
    %40 = vector.broadcast %39 : vector<16x1xf32> to vector<16x16xf32>
    %41 = arith.divf %37, %40 : vector<16x16xf32>
    %42 = arith.truncf %41 : vector<16x16xf32> to vector<16x16xbf16>
    %43 = vector.extract_strided_slice %8 {offsets = [0, 8], sizes = [16, 8], strides = [1, 1]} : vector<16x32xbf16> to vector<16x8xbf16>
    %cst_15 = arith.constant dense<0.000000e+00> : vector<16x8xf32>
    %44 = tpu.matmul %42, %43, %cst_15 {dimension_numbers = #tpu.dot_dimension_numbers<[1], [0], [0], [1], [0, 0, 1, 1], [], []>} : vector<16x16xbf16>, vector<16x8xbf16>, vector<16x8xf32> -> vector<16x8xf32>
    %45 = arith.truncf %44 : vector<16x8xf32> to vector<16x8xbf16>
    %c0_16 = arith.constant 0 : index
    %c8 = arith.constant 8 : index
    %46 = vector.load %arg16[%c0_16, %c8] : memref<16x32xbf16, #tpu.memory_space<vmem>>, vector<16x8xbf16>
    tpu.vector_store %arg16[%c0_16, %c8], %45 {strides = array<i32>} : memref<16x32xbf16, #tpu.memory_space<vmem>>, vector<16x8xbf16>,
    %47 = vector.extract_strided_slice %6 {offsets = [0, 16], sizes = [16, 8], strides = [1, 1]} : vector<16x32xbf16> to vector<16x8xbf16>
    %48 = vector.extract_strided_slice %7 {offsets = [0, 16], sizes = [16, 8], strides = [1, 1]} : vector<16x32xbf16> to vector<16x8xbf16>
    %cst_17 = arith.constant dense<0.000000e+00> : vector<16x16xf32>
    %49 = tpu.matmul %47, %48, %cst_17 {dimension_numbers = #tpu.dot_dimension_numbers<[1], [1], [0], [0], [0, 0, 1, 0], [], []>} : vector<16x8xbf16>, vector<16x8xbf16>, vector<16x16xf32> -> vector<16x16xf32>
    %cst_18 = arith.constant 0.353553385 : f32
    %50 = vector.broadcast %cst_18 : f32 to vector<16x16xf32>
    %51 = arith.mulf %49, %50 : vector<16x16xf32>
    %cst_19 = arith.constant dense<0xFF800000> : vector<16xf32>
    %52 = vector.multi_reduction <maximumf>, %51, %cst_19 [1] : vector<16x16xf32> to vector<16xf32>
    %53 = vector.shape_cast %52 : vector<16xf32> to vector<16x1xf32>
    %54 = vector.broadcast %53 : vector<16x1xf32> to vector<16x16xf32>
    %55 = arith.subf %51, %54 : vector<16x16xf32>
    %56 = math.exp %55 : vector<16x16xf32>
    %cst_20 = arith.constant dense<0.000000e+00> : vector<16xf32>
    %57 = vector.multi_reduction <add>, %56, %cst_20 [1] : vector<16x16xf32> to vector<16xf32>
    %58 = vector.shape_cast %57 : vector<16xf32> to vector<16x1xf32>
    %59 = vector.broadcast %58 : vector<16x1xf32> to vector<16x16xf32>
    %60 = arith.divf %56, %59 : vector<16x16xf32>
    %61 = arith.truncf %60 : vector<16x16xf32> to vector<16x16xbf16>
    %62 = vector.extract_strided_slice %8 {offsets = [0, 16], sizes = [16, 8], strides = [1, 1]} : vector<16x32xbf16> to vector<16x8xbf16>
    %cst_21 = arith.constant dense<0.000000e+00> : vector<16x8xf32>
    %63 = tpu.matmul %61, %62, %cst_21 {dimension_numbers = #tpu.dot_dimension_numbers<[1], [0], [0], [1], [0, 0, 1, 1], [], []>} : vector<16x16xbf16>, vector<16x8xbf16>, vector<16x8xf32> -> vector<16x8xf32>
    %64 = arith.truncf %63 : vector<16x8xf32> to vector<16x8xbf16>
    %c0_22 = arith.constant 0 : index
    %c16 = arith.constant 16 : index
    %65 = vector.load %arg16[%c0_22, %c16] : memref<16x32xbf16, #tpu.memory_space<vmem>>, vector<16x8xbf16>
    tpu.vector_store %arg16[%c0_22, %c16], %64 {strides = array<i32>} : memref<16x32xbf16, #tpu.memory_space<vmem>>, vector<16x8xbf16>,
    %66 = vector.extract_strided_slice %6 {offsets = [0, 24], sizes = [16, 8], strides = [1, 1]} : vector<16x32xbf16> to vector<16x8xbf16>
    %67 = vector.extract_strided_slice %7 {offsets = [0, 24], sizes = [16, 8], strides = [1, 1]} : vector<16x32xbf16> to vector<16x8xbf16>
    %cst_23 = arith.constant dense<0.000000e+00> : vector<16x16xf32>
    %68 = tpu.matmul %66, %67, %cst_23 {dimension_numbers = #tpu.dot_dimension_numbers<[1], [1], [0], [0], [0, 0, 1, 0], [], []>} : vector<16x8xbf16>, vector<16x8xbf16>, vector<16x16xf32> -> vector<16x16xf32>
    %cst_24 = arith.constant 0.353553385 : f32
    %69 = vector.broadcast %cst_24 : f32 to vector<16x16xf32>
    %70 = arith.mulf %68, %69 : vector<16x16xf32>
    %cst_25 = arith.constant dense<0xFF800000> : vector<16xf32>
    %71 = vector.multi_reduction <maximumf>, %70, %cst_25 [1] : vector<16x16xf32> to vector<16xf32>
    %72 = vector.shape_cast %71 : vector<16xf32> to vector<16x1xf32>
    %73 = vector.broadcast %72 : vector<16x1xf32> to vector<16x16xf32>
    %74 = arith.subf %70, %73 : vector<16x16xf32>
    %75 = math.exp %74 : vector<16x16xf32>
    %cst_26 = arith.constant dense<0.000000e+00> : vector<16xf32>
    %76 = vector.multi_reduction <add>, %75, %cst_26 [1] : vector<16x16xf32> to vector<16xf32>
    %77 = vector.shape_cast %76 : vector<16xf32> to vector<16x1xf32>
    %78 = vector.broadcast %77 : vector<16x1xf32> to vector<16x16xf32>
    %79 = arith.divf %75, %78 : vector<16x16xf32>
    %80 = arith.truncf %79 : vector<16x16xf32> to vector<16x16xbf16>
    %81 = vector.extract_strided_slice %8 {offsets = [0, 24], sizes = [16, 8], strides = [1, 1]} : vector<16x32xbf16> to vector<16x8xbf16>
    %cst_27 = arith.constant dense<0.000000e+00> : vector<16x8xf32>
    %82 = tpu.matmul %80, %81, %cst_27 {dimension_numbers = #tpu.dot_dimension_numbers<[1], [0], [0], [1], [0, 0, 1, 1], [], []>} : vector<16x16xbf16>, vector<16x8xbf16>, vector<16x8xf32> -> vector<16x8xf32>
    %83 = arith.truncf %82 : vector<16x8xf32> to vector<16x8xbf16>
    %c0_28 = arith.constant 0 : index
    %c24 = arith.constant 24 : index
    %84 = vector.load %arg16[%c0_28, %c24] : memref<16x32xbf16, #tpu.memory_space<vmem>>, vector<16x8xbf16>
    tpu.vector_store %arg16[%c0_28, %c24], %83 {strides = array<i32>} : memref<16x32xbf16, #tpu.memory_space<vmem>>, vector<16x8xbf16>,
    %c0_29 = arith.constant 0 : index
    %c0_30 = arith.constant 0 : index
    %85 = vector.load %arg16[%c0_29, %c0_30] : memref<16x32xbf16, #tpu.memory_space<vmem>>, vector<16x32xbf16>
    %c0_31 = arith.constant 0 : index
    %c0_32 = arith.constant 0 : index
    %86 = vector.load %arg8[%c0_31, %c0_32] : memref<32x32xbf16, #tpu.memory_space<vmem>>, vector<32x32xbf16>
    %cst_33 = arith.constant dense<0.000000e+00> : vector<16x32xf32>
    %87 = tpu.matmul %85, %86, %cst_33 {dimension_numbers = #tpu.dot_dimension_numbers<[1], [0], [0], [1], [0, 0, 1, 1], [], []>} : vector<16x32xbf16>, vector<32x32xbf16>, vector<16x32xf32> -> vector<16x32xf32>
    %c0_34 = arith.constant 0 : index
    %c0_35 = arith.constant 0 : index
    %88 = vector.load %arg9[%c0_34, %c0_35] : memref<1x32xf32, #tpu.memory_space<vmem>>, vector<1x32xf32>
    %89 = vector.broadcast %88 : vector<1x32xf32> to vector<16x32xf32>
    %90 = arith.addf %87, %89 : vector<16x32xf32>
    %c0_36 = arith.constant 0 : index
    %91 = arith.index_cast %4 : i32 to index
    %c0_37 = arith.constant 0 : index
    %92 = vector.load %arg2[%c0_36, %91, %c0_37] : memref<1x16x32xbf16, #tpu.memory_space<vmem>>, vector<1x16x32xbf16>
    %93 = vector.shape_cast %92 : vector<1x16x32xbf16> to vector<16x32xbf16>
    %94 = arith.extf %93 : vector<16x32xbf16> to vector<16x32xf32>
    %95 = arith.addf %90, %94 : vector<16x32xf32>
    %c0_38 = arith.constant 0 : index
    %c0_39 = arith.constant 0 : index
    %96 = vector.load %arg10[%c0_38, %c0_39] : memref<1x32xf32, #tpu.memory_space<vmem>>, vector<1x32xf32>
    %c0_40 = arith.constant 0 : index
    %c0_41 = arith.constant 0 : index
    %97 = vector.load %arg11[%c0_40, %c0_41] : memref<1x32xf32, #tpu.memory_space<vmem>>, vector<1x32xf32>
    %cst_42 = arith.constant dense<0.000000e+00> : vector<16xf32>
    %98 = vector.multi_reduction <add>, %95, %cst_42 [1] : vector<16x32xf32> to vector<16xf32>
    %99 = vector.shape_cast %98 : vector<16xf32> to vector<16x1xf32>
    %cst_43 = arith.constant 3.200000e+01 : f32
    %100 = vector.broadcast %cst_43 : f32 to vector<16x1xf32>
    %101 = arith.divf %99, %100 : vector<16x1xf32>
    %102 = vector.broadcast %101 : vector<16x1xf32> to vector<16x32xf32>
    %103 = arith.subf %95, %102 : vector<16x32xf32>
    %104 = arith.mulf %103, %103 : vector<16x32xf32>
    %cst_44 = arith.constant dense<0.000000e+00> : vector<16xf32>
    %105 = vector.multi_reduction <add>, %104, %cst_44 [1] : vector<16x32xf32> to vector<16xf32>
    %106 = vector.shape_cast %105 : vector<16xf32> to vector<16x1xf32>
    %cst_45 = arith.constant 3.200000e+01 : f32
    %107 = vector.broadcast %cst_45 : f32 to vector<16x1xf32>
    %108 = arith.divf %106, %107 : vector<16x1xf32>
    %109 = vector.broadcast %101 : vector<16x1xf32> to vector<16x32xf32>
    %110 = arith.subf %95, %109 : vector<16x32xf32>
    %cst_46 = arith.constant 9.99999974E-6 : f32
    %111 = vector.broadcast %cst_46 : f32 to vector<16x1xf32>
    %112 = arith.addf %108, %111 : vector<16x1xf32>
    %113 = math.rsqrt %112 : vector<16x1xf32>
    %114 = vector.broadcast %113 : vector<16x1xf32> to vector<16x32xf32>
    %115 = arith.mulf %110, %114 : vector<16x32xf32>
    %116 = vector.broadcast %96 : vector<1x32xf32> to vector<16x32xf32>
    %117 = arith.mulf %115, %116 : vector<16x32xf32>
    %118 = vector.broadcast %97 : vector<1x32xf32> to vector<16x32xf32>
    %119 = arith.addf %117, %118 : vector<16x32xf32>
    %120 = arith.truncf %119 : vector<16x32xf32> to vector<16x32xbf16>
    %c0_47 = arith.constant 0 : index
    %c0_48 = arith.constant 0 : index
    %c0_49 = arith.constant 0 : index
    %121 = vector.load %arg12[%c0_47, %c0_48, %c0_49] : memref<1x16x32xbf16, #tpu.memory_space<vmem>>, vector<1x16x32xbf16>
    %122 = vector.shape_cast %121 : vector<1x16x32xbf16> to vector<16x32xbf16>
    %123 = vector.shape_cast %120 : vector<16x32xbf16> to vector<1x16x32xbf16>
    tpu.vector_store %arg12[%c0_47, %c0_48, %c0_49], %123 {strides = array<i32>} : memref<1x16x32xbf16, #tpu.memory_space<vmem>>, vector<1x16x32xbf16>,
    return
  }
  func.func @transform_0(%arg0: i32, %arg1: i32) -> (i32, i32, i32) {
    %c0_i32 = arith.constant 0 : i32
    %c0_i32_0 = arith.constant 0 : i32
    %c0_i32_1 = arith.constant 0 : i32
    return %arg0, %c0_i32, %c0_i32_0 : i32, i32, i32
  }
  func.func @transform_1(%arg0: i32, %arg1: i32) -> (i32, i32, i32) {
    %c0_i32 = arith.constant 0 : i32
    %c0_i32_0 = arith.constant 0 : i32
    %c0_i32_1 = arith.constant 0 : i32
    return %arg0, %c0_i32, %c0_i32_0 : i32, i32, i32
  }
  func.func @transform_2(%arg0: i32, %arg1: i32) -> (i32, i32) {
    %c0_i32 = arith.constant 0 : i32
    %c0_i32_0 = arith.constant 0 : i32
    %c0_i32_1 = arith.constant 0 : i32
    return %c0_i32, %c0_i32_0 : i32, i32
  }
  func.func @transform_3(%arg0: i32, %arg1: i32) -> (i32, i32) {
    %c0_i32 = arith.constant 0 : i32
    %c0_i32_0 = arith.constant 0 : i32
    %c0_i32_1 = arith.constant 0 : i32
    return %c0_i32, %c0_i32_0 : i32, i32
  }
  func.func @transform_4(%arg0: i32, %arg1: i32) -> (i32, i32) {
    %c0_i32 = arith.constant 0 : i32
    %c0_i32_0 = arith.constant 0 : i32
    %c0_i32_1 = arith.constant 0 : i32
    return %c0_i32, %c0_i32_0 : i32, i32
  }
  func.func @transform_5(%arg0: i32, %arg1: i32) -> (i32, i32) {
    %c0_i32 = arith.constant 0 : i32
    %c0_i32_0 = arith.constant 0 : i32
    %c0_i32_1 = arith.constant 0 : i32
    return %c0_i32, %c0_i32_0 : i32, i32
  }
  func.func @transform_6(%arg0: i32, %arg1: i32) -> (i32, i32) {
    %c0_i32 = arith.constant 0 : i32
    %c0_i32_0 = arith.constant 0 : i32
    %c0_i32_1 = arith.constant 0 : i32
    return %c0_i32, %c0_i32_0 : i32, i32
  }
  func.func @transform_7(%arg0: i32, %arg1: i32) -> (i32, i32) {
    %c0_i32 = arith.constant 0 : i32
    %c0_i32_0 = arith.constant 0 : i32
    %c0_i32_1 = arith.constant 0 : i32
    return %c0_i32, %c0_i32_0 : i32, i32
  }
  func.func @transform_8(%arg0: i32, %arg1: i32) -> (i32, i32) {
    %c0_i32 = arith.constant 0 : i32
    %c0_i32_0 = arith.constant 0 : i32
    %c0_i32_1 = arith.constant 0 : i32
    return %c0_i32, %c0_i32_0 : i32, i32
  }
  func.func @transform_9(%arg0: i32, %arg1: i32) -> (i32, i32) {
    %c0_i32 = arith.constant 0 : i32
    %c0_i32_0 = arith.constant 0 : i32
    %c0_i32_1 = arith.constant 0 : i32
    return %c0_i32, %c0_i32_0 : i32, i32
  }
  func.func @transform_10(%arg0: i32, %arg1: i32) -> (i32, i32, i32) {
    %c0_i32 = arith.constant 0 : i32
    %c0_i32_0 = arith.constant 0 : i32
    return %arg0, %arg1, %c0_i32 : i32, i32, i32
  }
}

module attributes {stable_mosaic.version = 11 : i64} {
  func.func @_ffn_kernel(%arg0: i32, %arg1: memref<16x32xbf16, #tpu.memory_space<vmem>>, %arg2: memref<32x64xbf16, #tpu.memory_space<vmem>>, %arg3: memref<1x64xf32, #tpu.memory_space<vmem>>, %arg4: memref<64x32xbf16, #tpu.memory_space<vmem>>, %arg5: memref<1x32xf32, #tpu.memory_space<vmem>>, %arg6: memref<1x32xf32, #tpu.memory_space<vmem>>, %arg7: memref<1x32xf32, #tpu.memory_space<vmem>>, %arg8: memref<16x32xbf16, #tpu.memory_space<vmem>>) attributes {dimension_semantics = [#tpu.dimension_semantics<parallel>], iteration_bounds = array<i64: 1>, scalar_prefetch = 0 : i64, scratch_operands = 0 : i64, tpu.core_type = #tpu.core_type<tc>, window_params = [{transform_indices = @transform_0, window_bounds = array<i64: 16, 32>}, {pipeline_mode = #tpu.pipeline_mode<synchronous>, transform_indices = @transform_1, window_bounds = array<i64: 32, 64>}, {pipeline_mode = #tpu.pipeline_mode<synchronous>, transform_indices = @transform_2, window_bounds = array<i64: 1, 64>}, {pipeline_mode = #tpu.pipeline_mode<synchronous>, transform_indices = @transform_3, window_bounds = array<i64: 64, 32>}, {pipeline_mode = #tpu.pipeline_mode<synchronous>, transform_indices = @transform_4, window_bounds = array<i64: 1, 32>}, {pipeline_mode = #tpu.pipeline_mode<synchronous>, transform_indices = @transform_5, window_bounds = array<i64: 1, 32>}, {pipeline_mode = #tpu.pipeline_mode<synchronous>, transform_indices = @transform_6, window_bounds = array<i64: 1, 32>}, {transform_indices = @transform_7, window_bounds = array<i64: 16, 32>}]} {
    %c0 = arith.constant 0 : index
    %c0_0 = arith.constant 0 : index
    %0 = vector.load %arg1[%c0, %c0_0] : memref<16x32xbf16, #tpu.memory_space<vmem>>, vector<16x32xbf16>
    %1 = arith.extf %0 : vector<16x32xbf16> to vector<16x32xf32>
    %cst = arith.constant 2.000000e+00 : f32
    %2 = vector.broadcast %cst : f32 to vector<16x32xf32>
    %3 = arith.mulf %1, %2 : vector<16x32xf32>
    %c0_1 = arith.constant 0 : index
    %c0_2 = arith.constant 0 : index
    %4 = vector.load %arg6[%c0_1, %c0_2] : memref<1x32xf32, #tpu.memory_space<vmem>>, vector<1x32xf32>
    %c0_3 = arith.constant 0 : index
    %c0_4 = arith.constant 0 : index
    %5 = vector.load %arg7[%c0_3, %c0_4] : memref<1x32xf32, #tpu.memory_space<vmem>>, vector<1x32xf32>
    %cst_5 = arith.constant dense<0.000000e+00> : vector<16xf32>
    %6 = vector.multi_reduction <add>, %3, %cst_5 [1] : vector<16x32xf32> to vector<16xf32>
    %7 = vector.shape_cast %6 : vector<16xf32> to vector<16x1xf32>
    %cst_6 = arith.constant 3.200000e+01 : f32
    %8 = vector.broadcast %cst_6 : f32 to vector<16x1xf32>
    %9 = arith.divf %7, %8 : vector<16x1xf32>
    %10 = vector.broadcast %9 : vector<16x1xf32> to vector<16x32xf32>
    %11 = arith.subf %3, %10 : vector<16x32xf32>
    %12 = arith.mulf %11, %11 : vector<16x32xf32>
    %cst_7 = arith.constant dense<0.000000e+00> : vector<16xf32>
    %13 = vector.multi_reduction <add>, %12, %cst_7 [1] : vector<16x32xf32> to vector<16xf32>
    %14 = vector.shape_cast %13 : vector<16xf32> to vector<16x1xf32>
    %cst_8 = arith.constant 3.200000e+01 : f32
    %15 = vector.broadcast %cst_8 : f32 to vector<16x1xf32>
    %16 = arith.divf %14, %15 : vector<16x1xf32>
    %17 = vector.broadcast %9 : vector<16x1xf32> to vector<16x32xf32>
    %18 = arith.subf %3, %17 : vector<16x32xf32>
    %cst_9 = arith.constant 9.99999974E-6 : f32
    %19 = vector.broadcast %cst_9 : f32 to vector<16x1xf32>
    %20 = arith.addf %16, %19 : vector<16x1xf32>
    %21 = math.rsqrt %20 : vector<16x1xf32>
    %22 = vector.broadcast %21 : vector<16x1xf32> to vector<16x32xf32>
    %23 = arith.mulf %18, %22 : vector<16x32xf32>
    %24 = vector.broadcast %4 : vector<1x32xf32> to vector<16x32xf32>
    %25 = arith.mulf %23, %24 : vector<16x32xf32>
    %26 = vector.broadcast %5 : vector<1x32xf32> to vector<16x32xf32>
    %27 = arith.addf %25, %26 : vector<16x32xf32>
    %28 = arith.truncf %27 : vector<16x32xf32> to vector<16x32xbf16>
    %c0_10 = arith.constant 0 : index
    %c0_11 = arith.constant 0 : index
    %29 = vector.load %arg2[%c0_10, %c0_11] : memref<32x64xbf16, #tpu.memory_space<vmem>>, vector<32x64xbf16>
    %cst_12 = arith.constant dense<0.000000e+00> : vector<16x64xf32>
    %30 = tpu.matmul %28, %29, %cst_12 {dimension_numbers = #tpu.dot_dimension_numbers<[1], [0], [0], [1], [0, 0, 1, 1], [], []>} : vector<16x32xbf16>, vector<32x64xbf16>, vector<16x64xf32> -> vector<16x64xf32>
    %c0_13 = arith.constant 0 : index
    %c0_14 = arith.constant 0 : index
    %31 = vector.load %arg3[%c0_13, %c0_14] : memref<1x64xf32, #tpu.memory_space<vmem>>, vector<1x64xf32>
    %32 = vector.broadcast %31 : vector<1x64xf32> to vector<16x64xf32>
    %33 = arith.addf %30, %32 : vector<16x64xf32>
    %cst_15 = arith.constant 0.000000e+00 : f32
    %34 = vector.broadcast %cst_15 : f32 to vector<16x64xf32>
    %35 = arith.maximumf %33, %34 : vector<16x64xf32>
    %36 = arith.truncf %35 : vector<16x64xf32> to vector<16x64xbf16>
    %c0_16 = arith.constant 0 : index
    %c0_17 = arith.constant 0 : index
    %37 = vector.load %arg4[%c0_16, %c0_17] : memref<64x32xbf16, #tpu.memory_space<vmem>>, vector<64x32xbf16>
    %cst_18 = arith.constant dense<0.000000e+00> : vector<16x32xf32>
    %38 = tpu.matmul %36, %37, %cst_18 {dimension_numbers = #tpu.dot_dimension_numbers<[1], [0], [0], [1], [0, 0, 1, 1], [], []>} : vector<16x64xbf16>, vector<64x32xbf16>, vector<16x32xf32> -> vector<16x32xf32>
    %39 = arith.addf %27, %38 : vector<16x32xf32>
    %c0_19 = arith.constant 0 : index
    %c0_20 = arith.constant 0 : index
    %40 = vector.load %arg5[%c0_19, %c0_20] : memref<1x32xf32, #tpu.memory_space<vmem>>, vector<1x32xf32>
    %41 = vector.broadcast %40 : vector<1x32xf32> to vector<16x32xf32>
    %42 = arith.addf %39, %41 : vector<16x32xf32>
    %43 = arith.truncf %42 : vector<16x32xf32> to vector<16x32xbf16>
    %c0_21 = arith.constant 0 : index
    %c0_22 = arith.constant 0 : index
    %44 = vector.load %arg8[%c0_21, %c0_22] : memref<16x32xbf16, #tpu.memory_space<vmem>>, vector<16x32xbf16>
    tpu.vector_store %arg8[%c0_21, %c0_22], %43 {strides = array<i32>} : memref<16x32xbf16, #tpu.memory_space<vmem>>, vector<16x32xbf16>,
    return
  }
  func.func @transform_0(%arg0: i32) -> (i32, i32) {
    %c0_i32 = arith.constant 0 : i32
    %c0_i32_0 = arith.constant 0 : i32
    return %arg0, %c0_i32 : i32, i32
  }
  func.func @transform_1(%arg0: i32) -> (i32, i32) {
    %c0_i32 = arith.constant 0 : i32
    %c0_i32_0 = arith.constant 0 : i32
    %c0_i32_1 = arith.constant 0 : i32
    return %c0_i32, %c0_i32_0 : i32, i32
  }
  func.func @transform_2(%arg0: i32) -> (i32, i32) {
    %c0_i32 = arith.constant 0 : i32
    %c0_i32_0 = arith.constant 0 : i32
    %c0_i32_1 = arith.constant 0 : i32
    return %c0_i32, %c0_i32_0 : i32, i32
  }
  func.func @transform_3(%arg0: i32) -> (i32, i32) {
    %c0_i32 = arith.constant 0 : i32
    %c0_i32_0 = arith.constant 0 : i32
    %c0_i32_1 = arith.constant 0 : i32
    return %c0_i32, %c0_i32_0 : i32, i32
  }
  func.func @transform_4(%arg0: i32) -> (i32, i32) {
    %c0_i32 = arith.constant 0 : i32
    %c0_i32_0 = arith.constant 0 : i32
    %c0_i32_1 = arith.constant 0 : i32
    return %c0_i32, %c0_i32_0 : i32, i32
  }
  func.func @transform_5(%arg0: i32) -> (i32, i32) {
    %c0_i32 = arith.constant 0 : i32
    %c0_i32_0 = arith.constant 0 : i32
    %c0_i32_1 = arith.constant 0 : i32
    return %c0_i32, %c0_i32_0 : i32, i32
  }
  func.func @transform_6(%arg0: i32) -> (i32, i32) {
    %c0_i32 = arith.constant 0 : i32
    %c0_i32_0 = arith.constant 0 : i32
    %c0_i32_1 = arith.constant 0 : i32
    return %c0_i32, %c0_i32_0 : i32, i32
  }
  func.func @transform_7(%arg0: i32) -> (i32, i32) {
    %c0_i32 = arith.constant 0 : i32
    %c0_i32_0 = arith.constant 0 : i32
    return %arg0, %c0_i32 : i32, i32
  }
}

module attributes {stable_mosaic.version = 11 : i64} {
  func.func @_self_attn_kernel(%arg0: i32, %arg1: i32, %arg2: memref<1x8x32xbf16, #tpu.memory_space<vmem>>, %arg3: memref<1x8x32xbf16, #tpu.memory_space<vmem>>, %arg4: memref<32x64xbf16, #tpu.memory_space<vmem>>, %arg5: memref<1x64xf32, #tpu.memory_space<vmem>>, %arg6: memref<32x32xbf16, #tpu.memory_space<vmem>>, %arg7: memref<1x32xf32, #tpu.memory_space<vmem>>, %arg8: memref<32x32xbf16, #tpu.memory_space<vmem>>, %arg9: memref<1x32xf32, #tpu.memory_space<vmem>>, %arg10: memref<1x32xf32, #tpu.memory_space<vmem>>, %arg11: memref<1x32xf32, #tpu.memory_space<vmem>>, %arg12: memref<1x8x32xbf16, #tpu.memory_space<vmem>>, %arg13: memref<8x32xbf16, #tpu.memory_space<vmem>>, %arg14: memref<8x32xbf16, #tpu.memory_space<vmem>>, %arg15: memref<8x32xbf16, #tpu.memory_space<vmem>>, %arg16: memref<8x32xbf16, #tpu.memory_space<vmem>>) attributes {dimension_semantics = [#tpu.dimension_semantics<parallel>, #tpu.dimension_semantics<arbitrary>], iteration_bounds = array<i64: 2, 1>, scalar_prefetch = 0 : i64, scratch_operands = 4 : i64, tpu.core_type = #tpu.core_type<tc>, window_params = [{transform_indices = @transform_0, window_bounds = array<i64: 1, 8, 32>}, {transform_indices = @transform_1, window_bounds = array<i64: 1, 8, 32>}, {pipeline_mode = #tpu.pipeline_mode<synchronous>, transform_indices = @transform_2, window_bounds = array<i64: 32, 64>}, {pipeline_mode = #tpu.pipeline_mode<synchronous>, transform_indices = @transform_3, window_bounds = array<i64: 1, 64>}, {pipeline_mode = #tpu.pipeline_mode<synchronous>, transform_indices = @transform_4, window_bounds = array<i64: 32, 32>}, {pipeline_mode = #tpu.pipeline_mode<synchronous>, transform_indices = @transform_5, window_bounds = array<i64: 1, 32>}, {pipeline_mode = #tpu.pipeline_mode<synchronous>, transform_indices = @transform_6, window_bounds = array<i64: 32, 32>}, {pipeline_mode = #tpu.pipeline_mode<synchronous>, transform_indices = @transform_7, window_bounds = array<i64: 1, 32>}, {pipeline_mode = #tpu.pipeline_mode<synchronous>, transform_indices = @transform_8, window_bounds = array<i64: 1, 32>}, {pipeline_mode = #tpu.pipeline_mode<synchronous>, transform_indices = @transform_9, window_bounds = array<i64: 1, 32>}, {transform_indices = @transform_10, window_bounds = array<i64: 1, 8, 32>}]} {
    %c0_i32 = arith.constant 0 : i32
    %0 = arith.cmpi eq, %arg1, %c0_i32 : i32
    %1 = arith.extui %0 : i1 to i32
    %c0_i32_0 = arith.constant 0 : i32
    %2 = arith.cmpi ne, %1, %c0_i32_0 : i32
    scf.if %2 {
      %c0_50 = arith.constant 0 : index
      %c0_51 = arith.constant 0 : index
      %c0_52 = arith.constant 0 : index
      %124 = vector.load %arg2[%c0_50, %c0_51, %c0_52] : memref<1x8x32xbf16, #tpu.memory_space<vmem>>, vector<1x8x32xbf16>
      %125 = vector.shape_cast %124 : vector<1x8x32xbf16> to vector<8x32xbf16>
      %c0_53 = arith.constant 0 : index
      %c0_54 = arith.constant 0 : index
      %c0_55 = arith.constant 0 : index
      %126 = vector.load %arg3[%c0_53, %c0_54, %c0_55] : memref<1x8x32xbf16, #tpu.memory_space<vmem>>, vector<1x8x32xbf16>
      %127 = vector.shape_cast %126 : vector<1x8x32xbf16> to vector<8x32xbf16>
      %128 = arith.addf %125, %127 : vector<8x32xbf16>
      %c0_56 = arith.constant 0 : index
      %c0_57 = arith.constant 0 : index
      %129 = vector.load %arg4[%c0_56, %c0_57] : memref<32x64xbf16, #tpu.memory_space<vmem>>, vector<32x64xbf16>
      %cst_58 = arith.constant dense<0.000000e+00> : vector<8x64xf32>
      %130 = tpu.matmul %128, %129, %cst_58 {dimension_numbers = #tpu.dot_dimension_numbers<[1], [0], [0], [1], [0, 0, 1, 1], [], []>} : vector<8x32xbf16>, vector<32x64xbf16>, vector<8x64xf32> -> vector<8x64xf32>
      %c0_59 = arith.constant 0 : index
      %c0_60 = arith.constant 0 : index
      %131 = vector.load %arg5[%c0_59, %c0_60] : memref<1x64xf32, #tpu.memory_space<vmem>>, vector<1x64xf32>
      %132 = vector.broadcast %131 : vector<1x64xf32> to vector<8x64xf32>
      %133 = arith.addf %130, %132 : vector<8x64xf32>
      %c0_61 = arith.constant 0 : index
      %c0_62 = arith.constant 0 : index
      %134 = vector.load %arg6[%c0_61, %c0_62] : memref<32x32xbf16, #tpu.memory_space<vmem>>, vector<32x32xbf16>
      %cst_63 = arith.constant dense<0.000000e+00> : vector<8x32xf32>
      %135 = tpu.matmul %125, %134, %cst_63 {dimension_numbers = #tpu.dot_dimension_numbers<[1], [0], [0], [1], [0, 0, 1, 1], [], []>} : vector<8x32xbf16>, vector<32x32xbf16>, vector<8x32xf32> -> vector<8x32xf32>
      %c0_64 = arith.constant 0 : index
      %c0_65 = arith.constant 0 : index
      %136 = vector.load %arg7[%c0_64, %c0_65] : memref<1x32xf32, #tpu.memory_space<vmem>>, vector<1x32xf32>
      %137 = vector.broadcast %136 : vector<1x32xf32> to vector<8x32xf32>
      %138 = arith.addf %135, %137 : vector<8x32xf32>
      %139 = vector.extract_strided_slice %133 {offsets = [0, 0], sizes = [8, 32], strides = [1, 1]} : vector<8x64xf32> to vector<8x32xf32>
      %140 = arith.truncf %139 : vector<8x32xf32> to vector<8x32xbf16>
      %c0_66 = arith.constant 0 : index
      %c0_67 = arith.constant 0 : index
      %141 = vector.load %arg13[%c0_66, %c0_67] : memref<8x32xbf16, #tpu.memory_space<vmem>>, vector<8x32xbf16>
      tpu.vector_store %arg13[%c0_66, %c0_67], %140 {strides = array<i32>} : memref<8x32xbf16, #tpu.memory_space<vmem>>, vector<8x32xbf16>,
      %142 = vector.extract_strided_slice %133 {offsets = [0, 32], sizes = [8, 32], strides = [1, 1]} : vector<8x64xf32> to vector<8x32xf32>
      %143 = arith.truncf %142 : vector<8x32xf32> to vector<8x32xbf16>
      %c0_68 = arith.constant 0 : index
      %c0_69 = arith.constant 0 : index
      %144 = vector.load %arg14[%c0_68, %c0_69] : memref<8x32xbf16, #tpu.memory_space<vmem>>, vector<8x32xbf16>
      tpu.vector_store %arg14[%c0_68, %c0_69], %143 {strides = array<i32>} : memref<8x32xbf16, #tpu.memory_space<vmem>>, vector<8x32xbf16>,
      %145 = arith.truncf %138 : vector<8x32xf32> to vector<8x32xbf16>
      %c0_70 = arith.constant 0 : index
      %c0_71 = arith.constant 0 : index
      %146 = vector.load %arg15[%c0_70, %c0_71] : memref<8x32xbf16, #tpu.memory_space<vmem>>, vector<8x32xbf16>
      tpu.vector_store %arg15[%c0_70, %c0_71], %145 {strides = array<i32>} : memref<8x32xbf16, #tpu.memory_space<vmem>>, vector<8x32xbf16>,
    } else {
    }
    %c8_i32 = arith.constant 8 : i32
    %3 = arith.muli %arg1, %c8_i32 : i32
    %4 = tpu.assume_multiple %3, 8 : i32
    %5 = arith.index_cast %4 : i32 to index
    %c0 = arith.constant 0 : index
    %6 = vector.load %arg13[%5, %c0] : memref<8x32xbf16, #tpu.memory_space<vmem>>, vector<8x32xbf16>
    %c0_1 = arith.constant 0 : index
    %c0_2 = arith.constant 0 : index
    %7 = vector.load %arg14[%c0_1, %c0_2] : memref<8x32xbf16, #tpu.memory_space<vmem>>, vector<8x32xbf16>
    %c0_3 = arith.constant 0 : index
    %c0_4 = arith.constant 0 : index
    %8 = vector.load %arg15[%c0_3, %c0_4] : memref<8x32xbf16, #tpu.memory_space<vmem>>, vector<8x32xbf16>
    %9 = vector.extract_strided_slice %6 {offsets = [0, 0], sizes = [8, 8], strides = [1, 1]} : vector<8x32xbf16> to vector<8x8xbf16>
    %10 = vector.extract_strided_slice %7 {offsets = [0, 0], sizes = [8, 8], strides = [1, 1]} : vector<8x32xbf16> to vector<8x8xbf16>
    %cst = arith.constant dense<0.000000e+00> : vector<8x8xf32>
    %11 = tpu.matmul %9, %10, %cst {dimension_numbers = #tpu.dot_dimension_numbers<[1], [1], [0], [0], [0, 0, 1, 0], [], []>} : vector<8x8xbf16>, vector<8x8xbf16>, vector<8x8xf32> -> vector<8x8xf32>
    %cst_5 = arith.constant 0.353553385 : f32
    %12 = vector.broadcast %cst_5 : f32 to vector<8x8xf32>
    %13 = arith.mulf %11, %12 : vector<8x8xf32>
    %cst_6 = arith.constant dense<0xFF800000> : vector<8xf32>
    %14 = vector.multi_reduction <maximumf>, %13, %cst_6 [1] : vector<8x8xf32> to vector<8xf32>
    %15 = vector.shape_cast %14 : vector<8xf32> to vector<8x1xf32>
    %16 = vector.broadcast %15 : vector<8x1xf32> to vector<8x8xf32>
    %17 = arith.subf %13, %16 : vector<8x8xf32>
    %18 = math.exp %17 : vector<8x8xf32>
    %cst_7 = arith.constant dense<0.000000e+00> : vector<8xf32>
    %19 = vector.multi_reduction <add>, %18, %cst_7 [1] : vector<8x8xf32> to vector<8xf32>
    %20 = vector.shape_cast %19 : vector<8xf32> to vector<8x1xf32>
    %21 = vector.broadcast %20 : vector<8x1xf32> to vector<8x8xf32>
    %22 = arith.divf %18, %21 : vector<8x8xf32>
    %23 = arith.truncf %22 : vector<8x8xf32> to vector<8x8xbf16>
    %24 = vector.extract_strided_slice %8 {offsets = [0, 0], sizes = [8, 8], strides = [1, 1]} : vector<8x32xbf16> to vector<8x8xbf16>
    %cst_8 = arith.constant dense<0.000000e+00> : vector<8x8xf32>
    %25 = tpu.matmul %23, %24, %cst_8 {dimension_numbers = #tpu.dot_dimension_numbers<[1], [0], [0], [1], [0, 0, 1, 1], [], []>} : vector<8x8xbf16>, vector<8x8xbf16>, vector<8x8xf32> -> vector<8x8xf32>
    %26 = arith.truncf %25 : vector<8x8xf32> to vector<8x8xbf16>
    %c0_9 = arith.constant 0 : index
    %c0_10 = arith.constant 0 : index
    %27 = vector.load %arg16[%c0_9, %c0_10] : memref<8x32xbf16, #tpu.memory_space<vmem>>, vector<8x8xbf16>
    tpu.vector_store %arg16[%c0_9, %c0_10], %26 {strides = array<i32>} : memref<8x32xbf16, #tpu.memory_space<vmem>>, vector<8x8xbf16>,
    %28 = vector.extract_strided_slice %6 {offsets = [0, 8], sizes = [8, 8], strides = [1, 1]} : vector<8x32xbf16> to vector<8x8xbf16>
    %29 = vector.extract_strided_slice %7 {offsets = [0, 8], sizes = [8, 8], strides = [1, 1]} : vector<8x32xbf16> to vector<8x8xbf16>
    %cst_11 = arith.constant dense<0.000000e+00> : vector<8x8xf32>
    %30 = tpu.matmul %28, %29, %cst_11 {dimension_numbers = #tpu.dot_dimension_numbers<[1], [1], [0], [0], [0, 0, 1, 0], [], []>} : vector<8x8xbf16>, vector<8x8xbf16>, vector<8x8xf32> -> vector<8x8xf32>
    %cst_12 = arith.constant 0.353553385 : f32
    %31 = vector.broadcast %cst_12 : f32 to vector<8x8xf32>
    %32 = arith.mulf %30, %31 : vector<8x8xf32>
    %cst_13 = arith.constant dense<0xFF800000> : vector<8xf32>
    %33 = vector.multi_reduction <maximumf>, %32, %cst_13 [1] : vector<8x8xf32> to vector<8xf32>
    %34 = vector.shape_cast %33 : vector<8xf32> to vector<8x1xf32>
    %35 = vector.broadcast %34 : vector<8x1xf32> to vector<8x8xf32>
    %36 = arith.subf %32, %35 : vector<8x8xf32>
    %37 = math.exp %36 : vector<8x8xf32>
    %cst_14 = arith.constant dense<0.000000e+00> : vector<8xf32>
    %38 = vector.multi_reduction <add>, %37, %cst_14 [1] : vector<8x8xf32> to vector<8xf32>
    %39 = vector.shape_cast %38 : vector<8xf32> to vector<8x1xf32>
    %40 = vector.broadcast %39 : vector<8x1xf32> to vector<8x8xf32>
    %41 = arith.divf %37, %40 : vector<8x8xf32>
    %42 = arith.truncf %41 : vector<8x8xf32> to vector<8x8xbf16>
    %43 = vector.extract_strided_slice %8 {offsets = [0, 8], sizes = [8, 8], strides = [1, 1]} : vector<8x32xbf16> to vector<8x8xbf16>
    %cst_15 = arith.constant dense<0.000000e+00> : vector<8x8xf32>
    %44 = tpu.matmul %42, %43, %cst_15 {dimension_numbers = #tpu.dot_dimension_numbers<[1], [0], [0], [1], [0, 0, 1, 1], [], []>} : vector<8x8xbf16>, vector<8x8xbf16>, vector<8x8xf32> -> vector<8x8xf32>
    %45 = arith.truncf %44 : vector<8x8xf32> to vector<8x8xbf16>
    %c0_16 = arith.constant 0 : index
    %c8 = arith.constant 8 : index
    %46 = vector.load %arg16[%c0_16, %c8] : memref<8x32xbf16, #tpu.memory_space<vmem>>, vector<8x8xbf16>
    tpu.vector_store %arg16[%c0_16, %c8], %45 {strides = array<i32>} : memref<8x32xbf16, #tpu.memory_space<vmem>>, vector<8x8xbf16>,
    %47 = vector.extract_strided_slice %6 {offsets = [0, 16], sizes = [8, 8], strides = [1, 1]} : vector<8x32xbf16> to vector<8x8xbf16>
    %48 = vector.extract_strided_slice %7 {offsets = [0, 16], sizes = [8, 8], strides = [1, 1]} : vector<8x32xbf16> to vector<8x8xbf16>
    %cst_17 = arith.constant dense<0.000000e+00> : vector<8x8xf32>
    %49 = tpu.matmul %47, %48, %cst_17 {dimension_numbers = #tpu.dot_dimension_numbers<[1], [1], [0], [0], [0, 0, 1, 0], [], []>} : vector<8x8xbf16>, vector<8x8xbf16>, vector<8x8xf32> -> vector<8x8xf32>
    %cst_18 = arith.constant 0.353553385 : f32
    %50 = vector.broadcast %cst_18 : f32 to vector<8x8xf32>
    %51 = arith.mulf %49, %50 : vector<8x8xf32>
    %cst_19 = arith.constant dense<0xFF800000> : vector<8xf32>
    %52 = vector.multi_reduction <maximumf>, %51, %cst_19 [1] : vector<8x8xf32> to vector<8xf32>
    %53 = vector.shape_cast %52 : vector<8xf32> to vector<8x1xf32>
    %54 = vector.broadcast %53 : vector<8x1xf32> to vector<8x8xf32>
    %55 = arith.subf %51, %54 : vector<8x8xf32>
    %56 = math.exp %55 : vector<8x8xf32>
    %cst_20 = arith.constant dense<0.000000e+00> : vector<8xf32>
    %57 = vector.multi_reduction <add>, %56, %cst_20 [1] : vector<8x8xf32> to vector<8xf32>
    %58 = vector.shape_cast %57 : vector<8xf32> to vector<8x1xf32>
    %59 = vector.broadcast %58 : vector<8x1xf32> to vector<8x8xf32>
    %60 = arith.divf %56, %59 : vector<8x8xf32>
    %61 = arith.truncf %60 : vector<8x8xf32> to vector<8x8xbf16>
    %62 = vector.extract_strided_slice %8 {offsets = [0, 16], sizes = [8, 8], strides = [1, 1]} : vector<8x32xbf16> to vector<8x8xbf16>
    %cst_21 = arith.constant dense<0.000000e+00> : vector<8x8xf32>
    %63 = tpu.matmul %61, %62, %cst_21 {dimension_numbers = #tpu.dot_dimension_numbers<[1], [0], [0], [1], [0, 0, 1, 1], [], []>} : vector<8x8xbf16>, vector<8x8xbf16>, vector<8x8xf32> -> vector<8x8xf32>
    %64 = arith.truncf %63 : vector<8x8xf32> to vector<8x8xbf16>
    %c0_22 = arith.constant 0 : index
    %c16 = arith.constant 16 : index
    %65 = vector.load %arg16[%c0_22, %c16] : memref<8x32xbf16, #tpu.memory_space<vmem>>, vector<8x8xbf16>
    tpu.vector_store %arg16[%c0_22, %c16], %64 {strides = array<i32>} : memref<8x32xbf16, #tpu.memory_space<vmem>>, vector<8x8xbf16>,
    %66 = vector.extract_strided_slice %6 {offsets = [0, 24], sizes = [8, 8], strides = [1, 1]} : vector<8x32xbf16> to vector<8x8xbf16>
    %67 = vector.extract_strided_slice %7 {offsets = [0, 24], sizes = [8, 8], strides = [1, 1]} : vector<8x32xbf16> to vector<8x8xbf16>
    %cst_23 = arith.constant dense<0.000000e+00> : vector<8x8xf32>
    %68 = tpu.matmul %66, %67, %cst_23 {dimension_numbers = #tpu.dot_dimension_numbers<[1], [1], [0], [0], [0, 0, 1, 0], [], []>} : vector<8x8xbf16>, vector<8x8xbf16>, vector<8x8xf32> -> vector<8x8xf32>
    %cst_24 = arith.constant 0.353553385 : f32
    %69 = vector.broadcast %cst_24 : f32 to vector<8x8xf32>
    %70 = arith.mulf %68, %69 : vector<8x8xf32>
    %cst_25 = arith.constant dense<0xFF800000> : vector<8xf32>
    %71 = vector.multi_reduction <maximumf>, %70, %cst_25 [1] : vector<8x8xf32> to vector<8xf32>
    %72 = vector.shape_cast %71 : vector<8xf32> to vector<8x1xf32>
    %73 = vector.broadcast %72 : vector<8x1xf32> to vector<8x8xf32>
    %74 = arith.subf %70, %73 : vector<8x8xf32>
    %75 = math.exp %74 : vector<8x8xf32>
    %cst_26 = arith.constant dense<0.000000e+00> : vector<8xf32>
    %76 = vector.multi_reduction <add>, %75, %cst_26 [1] : vector<8x8xf32> to vector<8xf32>
    %77 = vector.shape_cast %76 : vector<8xf32> to vector<8x1xf32>
    %78 = vector.broadcast %77 : vector<8x1xf32> to vector<8x8xf32>
    %79 = arith.divf %75, %78 : vector<8x8xf32>
    %80 = arith.truncf %79 : vector<8x8xf32> to vector<8x8xbf16>
    %81 = vector.extract_strided_slice %8 {offsets = [0, 24], sizes = [8, 8], strides = [1, 1]} : vector<8x32xbf16> to vector<8x8xbf16>
    %cst_27 = arith.constant dense<0.000000e+00> : vector<8x8xf32>
    %82 = tpu.matmul %80, %81, %cst_27 {dimension_numbers = #tpu.dot_dimension_numbers<[1], [0], [0], [1], [0, 0, 1, 1], [], []>} : vector<8x8xbf16>, vector<8x8xbf16>, vector<8x8xf32> -> vector<8x8xf32>
    %83 = arith.truncf %82 : vector<8x8xf32> to vector<8x8xbf16>
    %c0_28 = arith.constant 0 : index
    %c24 = arith.constant 24 : index
    %84 = vector.load %arg16[%c0_28, %c24] : memref<8x32xbf16, #tpu.memory_space<vmem>>, vector<8x8xbf16>
    tpu.vector_store %arg16[%c0_28, %c24], %83 {strides = array<i32>} : memref<8x32xbf16, #tpu.memory_space<vmem>>, vector<8x8xbf16>,
    %c0_29 = arith.constant 0 : index
    %c0_30 = arith.constant 0 : index
    %85 = vector.load %arg16[%c0_29, %c0_30] : memref<8x32xbf16, #tpu.memory_space<vmem>>, vector<8x32xbf16>
    %c0_31 = arith.constant 0 : index
    %c0_32 = arith.constant 0 : index
    %86 = vector.load %arg8[%c0_31, %c0_32] : memref<32x32xbf16, #tpu.memory_space<vmem>>, vector<32x32xbf16>
    %cst_33 = arith.constant dense<0.000000e+00> : vector<8x32xf32>
    %87 = tpu.matmul %85, %86, %cst_33 {dimension_numbers = #tpu.dot_dimension_numbers<[1], [0], [0], [1], [0, 0, 1, 1], [], []>} : vector<8x32xbf16>, vector<32x32xbf16>, vector<8x32xf32> -> vector<8x32xf32>
    %c0_34 = arith.constant 0 : index
    %c0_35 = arith.constant 0 : index
    %88 = vector.load %arg9[%c0_34, %c0_35] : memref<1x32xf32, #tpu.memory_space<vmem>>, vector<1x32xf32>
    %89 = vector.broadcast %88 : vector<1x32xf32> to vector<8x32xf32>
    %90 = arith.addf %87, %89 : vector<8x32xf32>
    %c0_36 = arith.constant 0 : index
    %91 = arith.index_cast %4 : i32 to index
    %c0_37 = arith.constant 0 : index
    %92 = vector.load %arg2[%c0_36, %91, %c0_37] : memref<1x8x32xbf16, #tpu.memory_space<vmem>>, vector<1x8x32xbf16>
    %93 = vector.shape_cast %92 : vector<1x8x32xbf16> to vector<8x32xbf16>
    %94 = arith.extf %93 : vector<8x32xbf16> to vector<8x32xf32>
    %95 = arith.addf %90, %94 : vector<8x32xf32>
    %c0_38 = arith.constant 0 : index
    %c0_39 = arith.constant 0 : index
    %96 = vector.load %arg10[%c0_38, %c0_39] : memref<1x32xf32, #tpu.memory_space<vmem>>, vector<1x32xf32>
    %c0_40 = arith.constant 0 : index
    %c0_41 = arith.constant 0 : index
    %97 = vector.load %arg11[%c0_40, %c0_41] : memref<1x32xf32, #tpu.memory_space<vmem>>, vector<1x32xf32>
    %cst_42 = arith.constant dense<0.000000e+00> : vector<8xf32>
    %98 = vector.multi_reduction <add>, %95, %cst_42 [1] : vector<8x32xf32> to vector<8xf32>
    %99 = vector.shape_cast %98 : vector<8xf32> to vector<8x1xf32>
    %cst_43 = arith.constant 3.200000e+01 : f32
    %100 = vector.broadcast %cst_43 : f32 to vector<8x1xf32>
    %101 = arith.divf %99, %100 : vector<8x1xf32>
    %102 = vector.broadcast %101 : vector<8x1xf32> to vector<8x32xf32>
    %103 = arith.subf %95, %102 : vector<8x32xf32>
    %104 = arith.mulf %103, %103 : vector<8x32xf32>
    %cst_44 = arith.constant dense<0.000000e+00> : vector<8xf32>
    %105 = vector.multi_reduction <add>, %104, %cst_44 [1] : vector<8x32xf32> to vector<8xf32>
    %106 = vector.shape_cast %105 : vector<8xf32> to vector<8x1xf32>
    %cst_45 = arith.constant 3.200000e+01 : f32
    %107 = vector.broadcast %cst_45 : f32 to vector<8x1xf32>
    %108 = arith.divf %106, %107 : vector<8x1xf32>
    %109 = vector.broadcast %101 : vector<8x1xf32> to vector<8x32xf32>
    %110 = arith.subf %95, %109 : vector<8x32xf32>
    %cst_46 = arith.constant 9.99999974E-6 : f32
    %111 = vector.broadcast %cst_46 : f32 to vector<8x1xf32>
    %112 = arith.addf %108, %111 : vector<8x1xf32>
    %113 = math.rsqrt %112 : vector<8x1xf32>
    %114 = vector.broadcast %113 : vector<8x1xf32> to vector<8x32xf32>
    %115 = arith.mulf %110, %114 : vector<8x32xf32>
    %116 = vector.broadcast %96 : vector<1x32xf32> to vector<8x32xf32>
    %117 = arith.mulf %115, %116 : vector<8x32xf32>
    %118 = vector.broadcast %97 : vector<1x32xf32> to vector<8x32xf32>
    %119 = arith.addf %117, %118 : vector<8x32xf32>
    %120 = arith.truncf %119 : vector<8x32xf32> to vector<8x32xbf16>
    %c0_47 = arith.constant 0 : index
    %c0_48 = arith.constant 0 : index
    %c0_49 = arith.constant 0 : index
    %121 = vector.load %arg12[%c0_47, %c0_48, %c0_49] : memref<1x8x32xbf16, #tpu.memory_space<vmem>>, vector<1x8x32xbf16>
    %122 = vector.shape_cast %121 : vector<1x8x32xbf16> to vector<8x32xbf16>
    %123 = vector.shape_cast %120 : vector<8x32xbf16> to vector<1x8x32xbf16>
    tpu.vector_store %arg12[%c0_47, %c0_48, %c0_49], %123 {strides = array<i32>} : memref<1x8x32xbf16, #tpu.memory_space<vmem>>, vector<1x8x32xbf16>,
    return
  }
  func.func @transform_0(%arg0: i32, %arg1: i32) -> (i32, i32, i32) {
    %c0_i32 = arith.constant 0 : i32
    %c0_i32_0 = arith.constant 0 : i32
    %c0_i32_1 = arith.constant 0 : i32
    return %arg0, %c0_i32, %c0_i32_0 : i32, i32, i32
  }
  func.func @transform_1(%arg0: i32, %arg1: i32) -> (i32, i32, i32) {
    %c0_i32 = arith.constant 0 : i32
    %c0_i32_0 = arith.constant 0 : i32
    %c0_i32_1 = arith.constant 0 : i32
    return %arg0, %c0_i32, %c0_i32_0 : i32, i32, i32
  }
  func.func @transform_2(%arg0: i32, %arg1: i32) -> (i32, i32) {
    %c0_i32 = arith.constant 0 : i32
    %c0_i32_0 = arith.constant 0 : i32
    %c0_i32_1 = arith.constant 0 : i32
    return %c0_i32, %c0_i32_0 : i32, i32
  }
  func.func @transform_3(%arg0: i32, %arg1: i32) -> (i32, i32) {
    %c0_i32 = arith.constant 0 : i32
    %c0_i32_0 = arith.constant 0 : i32
    %c0_i32_1 = arith.constant 0 : i32
    return %c0_i32, %c0_i32_0 : i32, i32
  }
  func.func @transform_4(%arg0: i32, %arg1: i32) -> (i32, i32) {
    %c0_i32 = arith.constant 0 : i32
    %c0_i32_0 = arith.constant 0 : i32
    %c0_i32_1 = arith.constant 0 : i32
    return %c0_i32, %c0_i32_0 : i32, i32
  }
  func.func @transform_5(%arg0: i32, %arg1: i32) -> (i32, i32) {
    %c0_i32 = arith.constant 0 : i32
    %c0_i32_0 = arith.constant 0 : i32
    %c0_i32_1 = arith.constant 0 : i32
    return %c0_i32, %c0_i32_0 : i32, i32
  }
  func.func @transform_6(%arg0: i32, %arg1: i32) -> (i32, i32) {
    %c0_i32 = arith.constant 0 : i32
    %c0_i32_0 = arith.constant 0 : i32
    %c0_i32_1 = arith.constant 0 : i32
    return %c0_i32, %c0_i32_0 : i32, i32
  }
  func.func @transform_7(%arg0: i32, %arg1: i32) -> (i32, i32) {
    %c0_i32 = arith.constant 0 : i32
    %c0_i32_0 = arith.constant 0 : i32
    %c0_i32_1 = arith.constant 0 : i32
    return %c0_i32, %c0_i32_0 : i32, i32
  }
  func.func @transform_8(%arg0: i32, %arg1: i32) -> (i32, i32) {
    %c0_i32 = arith.constant 0 : i32
    %c0_i32_0 = arith.constant 0 : i32
    %c0_i32_1 = arith.constant 0 : i32
    return %c0_i32, %c0_i32_0 : i32, i32
  }
  func.func @transform_9(%arg0: i32, %arg1: i32) -> (i32, i32) {
    %c0_i32 = arith.constant 0 : i32
    %c0_i32_0 = arith.constant 0 : i32
    %c0_i32_1 = arith.constant 0 : i32
    return %c0_i32, %c0_i32_0 : i32, i32
  }
  func.func @transform_10(%arg0: i32, %arg1: i32) -> (i32, i32, i32) {
    %c0_i32 = arith.constant 0 : i32
    %c0_i32_0 = arith.constant 0 : i32
    return %arg0, %arg1, %c0_i32 : i32, i32, i32
  }
}

module attributes {stable_mosaic.version = 11 : i64} {
  func.func @_ln_kernel(%arg0: i32, %arg1: memref<16x32xbf16, #tpu.memory_space<vmem>>, %arg2: memref<1x32xf32, #tpu.memory_space<vmem>>, %arg3: memref<1x32xf32, #tpu.memory_space<vmem>>, %arg4: memref<16x32xbf16, #tpu.memory_space<vmem>>) attributes {dimension_semantics = [#tpu.dimension_semantics<parallel>], iteration_bounds = array<i64: 1>, scalar_prefetch = 0 : i64, scratch_operands = 0 : i64, tpu.core_type = #tpu.core_type<tc>, window_params = [{transform_indices = @transform_0, window_bounds = array<i64: 16, 32>}, {pipeline_mode = #tpu.pipeline_mode<synchronous>, transform_indices = @transform_1, window_bounds = array<i64: 1, 32>}, {pipeline_mode = #tpu.pipeline_mode<synchronous>, transform_indices = @transform_2, window_bounds = array<i64: 1, 32>}, {transform_indices = @transform_3, window_bounds = array<i64: 16, 32>}]} {
    %c0 = arith.constant 0 : index
    %c0_0 = arith.constant 0 : index
    %0 = vector.load %arg1[%c0, %c0_0] : memref<16x32xbf16, #tpu.memory_space<vmem>>, vector<16x32xbf16>
    %1 = arith.extf %0 : vector<16x32xbf16> to vector<16x32xf32>
    %c0_1 = arith.constant 0 : index
    %c0_2 = arith.constant 0 : index
    %2 = vector.load %arg2[%c0_1, %c0_2] : memref<1x32xf32, #tpu.memory_space<vmem>>, vector<1x32xf32>
    %c0_3 = arith.constant 0 : index
    %c0_4 = arith.constant 0 : index
    %3 = vector.load %arg3[%c0_3, %c0_4] : memref<1x32xf32, #tpu.memory_space<vmem>>, vector<1x32xf32>
    %cst = arith.constant dense<0.000000e+00> : vector<16xf32>
    %4 = vector.multi_reduction <add>, %1, %cst [1] : vector<16x32xf32> to vector<16xf32>
    %5 = vector.shape_cast %4 : vector<16xf32> to vector<16x1xf32>
    %cst_5 = arith.constant 3.200000e+01 : f32
    %6 = vector.broadcast %cst_5 : f32 to vector<16x1xf32>
    %7 = arith.divf %5, %6 : vector<16x1xf32>
    %8 = vector.broadcast %7 : vector<16x1xf32> to vector<16x32xf32>
    %9 = arith.subf %1, %8 : vector<16x32xf32>
    %10 = arith.mulf %9, %9 : vector<16x32xf32>
    %cst_6 = arith.constant dense<0.000000e+00> : vector<16xf32>
    %11 = vector.multi_reduction <add>, %10, %cst_6 [1] : vector<16x32xf32> to vector<16xf32>
    %12 = vector.shape_cast %11 : vector<16xf32> to vector<16x1xf32>
    %cst_7 = arith.constant 3.200000e+01 : f32
    %13 = vector.broadcast %cst_7 : f32 to vector<16x1xf32>
    %14 = arith.divf %12, %13 : vector<16x1xf32>
    %15 = vector.broadcast %7 : vector<16x1xf32> to vector<16x32xf32>
    %16 = arith.subf %1, %15 : vector<16x32xf32>
    %cst_8 = arith.constant 9.99999974E-6 : f32
    %17 = vector.broadcast %cst_8 : f32 to vector<16x1xf32>
    %18 = arith.addf %14, %17 : vector<16x1xf32>
    %19 = math.rsqrt %18 : vector<16x1xf32>
    %20 = vector.broadcast %19 : vector<16x1xf32> to vector<16x32xf32>
    %21 = arith.mulf %16, %20 : vector<16x32xf32>
    %22 = vector.broadcast %2 : vector<1x32xf32> to vector<16x32xf32>
    %23 = arith.mulf %21, %22 : vector<16x32xf32>
    %24 = vector.broadcast %3 : vector<1x32xf32> to vector<16x32xf32>
    %25 = arith.addf %23, %24 : vector<16x32xf32>
    %26 = arith.truncf %25 : vector<16x32xf32> to vector<16x32xbf16>
    %c0_9 = arith.constant 0 : index
    %c0_10 = arith.constant 0 : index
    %27 = vector.load %arg4[%c0_9, %c0_10] : memref<16x32xbf16, #tpu.memory_space<vmem>>, vector<16x32xbf16>
    tpu.vector_store %arg4[%c0_9, %c0_10], %26 {strides = array<i32>} : memref<16x32xbf16, #tpu.memory_space<vmem>>, vector<16x32xbf16>,
    return
  }
  func.func @transform_0(%arg0: i32) -> (i32, i32) {
    %c0_i32 = arith.constant 0 : i32
    %c0_i32_0 = arith.constant 0 : i32
    return %arg0, %c0_i32 : i32, i32
  }
  func.func @transform_1(%arg0: i32) -> (i32, i32) {
    %c0_i32 = arith.constant 0 : i32
    %c0_i32_0 = arith.constant 0 : i32
    %c0_i32_1 = arith.constant 0 : i32
    return %c0_i32, %c0_i32_0 : i32, i32
  }
  func.func @transform_2(%arg0: i32) -> (i32, i32) {
    %c0_i32 = arith.constant 0 : i32
    %c0_i32_0 = arith.constant 0 : i32
    %c0_i32_1 = arith.constant 0 : i32
    return %c0_i32, %c0_i32_0 : i32, i32
  }
  func.func @transform_3(%arg0: i32) -> (i32, i32) {
    %c0_i32 = arith.constant 0 : i32
    %c0_i32_0 = arith.constant 0 : i32
    return %arg0, %c0_i32 : i32, i32
  }
}

</mosaic_0001>

<bundles_post_ra>
// kernel: transformer_forward.10
= control target key start
LH: loop header
LB: loop body
LE: loop exit
PB: predicated region body
PF: predicated region fallthrough
CT: control target
= control target key end

     0   :  { %vm68_vm0 = vcmask 261120   ;;  %vm162_vm1 = vcmask 523264   ;;  %vm324_vm2 = vcmask 257024   ;;  %s507_s1 = inlined_call_operand.vmem [shape: bf16[32,64], index: 1, kind: input, shape index: {}]   ;;  %s508_s0 = inlined_call_operand.vmem [shape: bf16[32,32], index: 0, kind: input, shape index: {}]   ;;  %s509_s3 = inlined_call_operand.vmem [shape: bf16[64,32], index: 3, kind: input, shape index: {}]   ;;  %s510_s2 = inlined_call_operand.vmem [shape: f32[1,64], index: 2, kind: input, shape index: {}]   ;;  %s511_s4 = inlined_call_operand.vmem [shape: f32[1,32], index: 4, kind: input, shape index: {}]   ;;  %s512_s5 = inlined_call_operand.vmem [shape: f32[1,32], index: 5, kind: input, shape index: {}]   ;;  %s513_s6 = inlined_call_operand.vmem [shape: f32[1,32], index: 6, kind: input, shape index: {}]   ;;  %s514_s7 = inlined_call_operand.vmem [shape: bf16[32,32], index: 7, kind: output, shape index: {}]  }
   0x1   :  { %v387_v0 = vld [vmem:[%s507_s1] sm:$0xff]   ;;  %v388_v1 = vld [vmem:[%s507_s1 + $0x8] sm:$0xff]   ;;  %v393_v6 = vld [vmem:[%s509_s3 + $0x10] sm:$0xff]  }
   0x2   :  { %367 = vmatprep.subr.bf16.mxu0 %v387_v0  ;;  %v27_v2 = vld [vmem:[%s508_s0] sm:$0xff]   ;;  %v29_v3 = vld [vmem:[%s508_s0 + $0x8] sm:$0xff]   ;;  %v394_v7 = vld [vmem:[%s509_s3 + $0x18] sm:$0xff]  }
   0x3   :  { %368 = vmatpush3.bf16.msra.mxu0 %v387_v0  ;;  %v391_v4 = vld [vmem:[%s509_s3] sm:$0xff]   ;;  %v392_v5 = vld [vmem:[%s509_s3 + $0x8] sm:$0xff]   ;;  %371 = vmatprep.mubr.msk.bf16.mxu0 %vm68_vm0, %v27_v2  ;;  %v33_v23 = vunpack.c.l.bf16 %v29_v3  ;;  %v31_v24 = vunpack.c.l.bf16 %v27_v2  ;;  %v34_v25 = vunpack.c.h.bf16 %v29_v3  ;;  %v32_v27 = vunpack.c.h.bf16 %v27_v2 }
   0x4   :  { %369 = vmatprep.subr.bf16.mxu0 %v388_v1  ;;  %375 = vmatprep.subr.bf16.mxu1 %v391_v4  ;;  %v333_v8 = vld [vmem:[%s510_s2] ss:$0 sm:$0xff] }
   0x5   :  { %376 = vmatpush3.bf16.msra.mxu1 %v391_v4  ;;  %v346_v28 = vld [vmem:[%s511_s4] ss:$0 sm:$0xff] }
   0x6   :  { %377 = vmatprep.subr.bf16.mxu1 %v392_v5 }
   0x7   :  { %370 = vmatpush3.bf16.msra.mxu0 %v388_v1 }
   0x9   :  { %378 = vmatpush3.bf16.msra.mxu1 %v392_v5 }
   0xa   :  { %372 = vmatmul.mubr.msk.bf16.vlgmr.msra.gmra.mrb[0].mxu0 %vm68_vm0, %v29_v3  ;;  %379 = vmatprep.subr.bf16.mxu1 %v393_v6 }
   0xd   :  { %380 = vmatpush3.bf16.msra.mxu1 %v393_v6 }
   0xe   :  { %381 = vmatprep.subr.bf16.mxu1 %v394_v7 }
  0x11   :  { %382 = vmatpush3.bf16.msra.mxu1 %v394_v7 }
  0xdd   :  { %v373_v9 = vpop.f32.mrb[0].mxu0 }
  0xde   :  { %v118_v10 = vadd.f32 %v373_v9, %v333_v8  ;;  %v109_v11 = vpop.f32.mrb[1].mxu0 }
  0xdf   :  { %v110_v12 = vadd.f32 %v333_v8, %v109_v11  ;;  %v374_v13 = vpop.f32.mrb[2].mxu0 }
  0xe0   :  { %v121_v14 = vadd.f32 %v374_v13, %v333_v8  ;;  %v112_v15 = vpop.f32.mrb[3].mxu0  ;;  %v126_v17 = vmax.f32 %v118_v10, 0.0  ;;  %v347_v13 = vld [vmem:[%s512_s5] ss:$0 sm:$0xff] }
  0xe1   :  { %v113_v16 = vadd.f32 %v333_v8, %v112_v15  ;;  %v124_v19 = vmax.f32 %v110_v12, 0.0  ;;  %v348_v15 = vld [vmem:[%s513_s6] ss:$0 sm:$0xff] }
  0xe2   :  { %v127_v18 = vmax.f32 %v121_v14, 0.0 }
  0xe3   :  { %v125_v20 = vmax.f32 %v113_v16, 0.0 }
  0xe4   :  { %v129_v21 = vpack.c.bf16 %v127_v18, %v126_v17 }
  0xe5   :  { %v128_v22 = vpack.c.bf16 %v125_v20, %v124_v19 }
  0xe7   :  { %383 = vmatprep.mubr.msk.bf16.mxu1 %vm162_vm1, %v128_v22 }
  0xe8   :  { %384 = vmatmul.mubr.msk.bf16.vlgmr.msra.gmra.mrb[0].mxu1 %vm162_vm1, %v129_v21 }
 0x1bb   :  { %v385_v26 = vpop.f32.mrb[0].mxu1 }
 0x1bc   :  { %v220_v29 = vadd.f32 %v385_v26, %v33_v23  ;;  %v203_v30 = vpop.f32.mrb[1].mxu1 }
 0x1bd   :  { %v218_v31 = vadd.f32 %v203_v30, %v31_v24  ;;  %v386_v32 = vpop.f32.mrb[2].mxu1 }
 0x1be   :  { %v221_v33 = vadd.f32 %v386_v32, %v34_v25  ;;  %v206_v34 = vpop.f32.mrb[3].mxu1  ;;  %v231_v35 = vadd.f32 %v346_v28, %v220_v29 }
 0x1bf   :  { %v219_v36 = vadd.f32 %v206_v34, %v32_v27  ;;  %v229_v37 = vadd.f32 %v346_v28, %v218_v31 }
 0x1c0   :  { %v241_v38 = vsel %vm68_vm0, %v231_v35, 0.0  ;;  %v232_v39 = vadd.f32 %v346_v28, %v221_v33 }
 0x1c1   :  { %242 = vadd.xlane.f32.xlu1 %v241_v38  ;;  %v235_v40 = vsel %vm68_vm0, %v229_v37, 0.0  ;;  %v230_v41 = vadd.f32 %v346_v28, %v219_v36 }
 0x1c2   :  { %236 = vadd.xlane.f32.xlu0 %v235_v40  ;;  %v244_v42 = vsel %vm68_vm0, %v232_v39, 0.0 }
 0x1c3   :  { %v238_v43 = vsel %vm68_vm0, %v230_v41, 0.0 }
 0x1c5   :  { %245 = vadd.xlane.f32.xlu1 %v244_v42 }
 0x1c6   :  { %239 = vadd.xlane.f32.xlu0 %v238_v43 }
 0x24e   :  { %v243_v44 = vpop.xlane.xlu1 %242 }
 0x24f   :  { %v250_v45 = vmul.f32 0.03125, %v243_v44  ;;  %v237_v46 = vpop.xlane.xlu0 %236 }
 0x250   :  { %v248_v47 = vmul.f32 0.03125, %v237_v46 }
 0x251   :  { %v254_v48 = vsub.f32 %v231_v35, %v250_v45 }
 0x252   :  { %v252_v49 = vsub.f32 %v229_v37, %v248_v47  ;;  %v246_v50 = vpop.xlane.xlu1 %245 }
 0x253   :  { %v251_v51 = vmul.f32 0.03125, %v246_v50  ;;  %v240_v52 = vpop.xlane.xlu0 %239  ;;  %v258_v58 = vmul.f32 %v254_v48, %v254_v48 }
 0x254   :  { %v249_v53 = vmul.f32 0.03125, %v240_v52  ;;  %v256_v54 = vmul.f32 %v252_v49, %v252_v49 }
 0x255   :  { %v255_v55 = vsub.f32 %v232_v39, %v251_v51  ;;  %v266_v60 = vsel %vm68_vm0, %v258_v58, 0.0 }
 0x256   :  { %v253_v56 = vsub.f32 %v230_v41, %v249_v53  ;;  %v260_v57 = vsel %vm68_vm0, %v256_v54, 0.0 }
 0x257   :  { %261 = vadd.xlane.f32.xlu0 %v260_v57  ;;  %v259_v62 = vmul.f32 %v255_v55, %v255_v55 }
 0x258   :  { %v257_v59 = vmul.f32 %v253_v56, %v253_v56 }
 0x259   :  { %v269_v63 = vsel %vm68_vm0, %v259_v62, 0.0 }
 0x25a   :  { %v263_v61 = vsel %vm68_vm0, %v257_v59, 0.0 }
 0x25b   :  { %267 = vadd.xlane.f32.xlu0 %v266_v60  ;;  %264 = vadd.xlane.f32.xlu1 %v263_v61 }
 0x25f   :  { %270 = vadd.xlane.f32.xlu1 %v269_v63 }
 0x2e4   :  { %v262_v0 = vpop.xlane.xlu0 %261 }
 0x2e5   :  { %v272_v1 = vmul.f32 0.03125, %v262_v0 }
 0x2e7   :  { %v276_v2 = vadd.f32 1e-05, %v272_v1 }
 0x2e8   :  { %v265_v3 = vpop.xlane.xlu1 %264  ;;  %v268_v4 = vpop.xlane.xlu0 %267 }
 0x2e9   :  { %397 = vrsqrt.f32 %v276_v2  ;;  %v273_v5 = vmul.f32 0.03125, %v265_v3  ;;  %v274_v6 = vmul.f32 0.03125, %v268_v4 }
 0x2eb   :  { %v277_v7 = vadd.f32 1e-05, %v273_v5  ;;  %v278_v8 = vadd.f32 1e-05, %v274_v6 }
 0x2ec   :  { %v271_v9 = vpop.xlane.xlu1 %270 }
 0x2ed   :  { %399 = vrsqrt.f32 %v277_v7  ;;  %v275_v10 = vmul.f32 0.03125, %v271_v9 }
 0x2ee   :  { %401 = vrsqrt.f32 %v278_v8 }
 0x2ef   :  { %v279_v11 = vadd.f32 1e-05, %v275_v10 }
 0x2f1   :  { %403 = vrsqrt.f32 %v279_v11 }
 0x2f3   :  { %v398_v12 = vpop.eup %397 }
 0x2f4   :  { %v284_v14 = vmul.f32 %v398_v12, %v252_v49 }
 0x2f6   :  { %v294_v16 = vmul.f32 %v347_v13, %v284_v14 }
 0x2f7   :  { %v400_v17 = vpop.eup %399 }
 0x2f8   :  { %v402_v18 = vpop.eup %401  ;;  %v304_v19 = vadd.f32 %v348_v15, %v294_v16  ;;  %v285_v20 = vmul.f32 %v400_v17, %v253_v56 }
 0x2f9   :  { %v286_v21 = vmul.f32 %v402_v18, %v254_v48 }
 0x2fa   :  { %v353_v22 = vpack.c.bf16 %v304_v19, %v304_v19  ;;  %v295_v23 = vmul.f32 %v347_v13, %v285_v20 }
 0x2fb   :  { %v404_v24 = vpop.eup %403  ;;  %v296_v25 = vmul.f32 %v347_v13, %v286_v21 }
 0x2fc   :  { %325 = vst.msk [vmem:[%s514_s7] sm:$0xf] %vm324_vm2, %v353_v22  ;;  %v305_v26 = vadd.f32 %v348_v15, %v295_v23  ;;  %v287_v27 = vmul.f32 %v404_v24, %v255_v55 }
 0x2fd   :  { %v306_v28 = vadd.f32 %v348_v15, %v296_v25 }
 0x2fe   :  { %v354_v29 = vpack.c.bf16 %v305_v26, %v305_v26  ;;  %v297_v30 = vmul.f32 %v347_v13, %v287_v27 }
 0x2ff   :  { %v355_v31 = vpack.c.bf16 %v306_v28, %v306_v28 }
 0x300   :  { %326 = vst.msk [vmem:[%s514_s7 + $0x4] sm:$0xf] %vm324_vm2, %v354_v29  ;;  %v307_v32 = vadd.f32 %v348_v15, %v297_v30 }
 0x301   :  { %327 = vst.msk [vmem:[%s514_s7 + $0x8] sm:$0xf] %vm324_vm2, %v355_v31 }
 0x302   :  { %v356_v33 = vpack.c.bf16 %v307_v32, %v307_v32 }
 0x304   :  { %328 = vst.msk [vmem:[%s514_s7 + $0xc] sm:$0xf] %vm324_vm2, %v356_v33 }

// kernel: transformer_forward.14
= control target key start
LH: loop header
LB: loop body
LE: loop exit
PB: predicated region body
PF: predicated region fallthrough
CT: control target
= control target key end

     0   :  { %vm35_vm0 = vcmask 261120   ;;  %v313_v18 = vmov 0.0   ;;  %vm314_vm1 = vmmov 0   ;;  %vm182_vm2 = vcmask 523264   ;;  %s399_s0 = inlined_call_operand.vmem [shape: bf16[16,32], index: 0, kind: input, shape index: {}]   ;;  %s400_s1 = inlined_call_operand.vmem [shape: bf16[32,64], index: 1, kind: input, shape index: {}]   ;;  %s401_s3 = inlined_call_operand.vmem [shape: bf16[64,32], index: 3, kind: input, shape index: {}]   ;;  %s402_s5 = inlined_call_operand.vmem [shape: f32[1,32], index: 5, kind: input, shape index: {}]   ;;  %s403_s6 = inlined_call_operand.vmem [shape: f32[1,32], index: 6, kind: input, shape index: {}]   ;;  %s404_s2 = inlined_call_operand.vmem [shape: f32[1,64], index: 2, kind: input, shape index: {}]   ;;  %s405_s4 = inlined_call_operand.vmem [shape: f32[1,32], index: 4, kind: input, shape index: {}]   ;;  %s406_s7 = inlined_call_operand.vmem [shape: bf16[16,32], index: 7, kind: output, shape index: {}]  }
   0x1   :  { %v270_v0 = vld [vmem:[%s399_s0] sm:$0xff]   ;;  %281 = vmatprep.subr.bf16.mxu0 %v313_v18  ;;  %289 = vmatprep.subr.bf16.mxu1 %v313_v18  ;;  %v304_v19 = vld [vmem:[%s400_s1 + $0x8] sm:$0xff]   ;;  %v307_v39 = vld [vmem:[%s401_s3 + $0x10] sm:$0xff]   ;;  %vm246_vm3 = vcmask 257024  }
   0x2   :  { %v271_v1 = vunpack.c.l.bf16 %v270_v0  ;;  %v272_v2 = vunpack.c.h.bf16 %v270_v0  ;;  %v303_v17 = vld [vmem:[%s400_s1] sm:$0xff]   ;;  %285 = vmatprep.mubr.msk.bf16.mxu0 %vm314_vm1, %v313_v18  ;;  %297 = vmatprep.mubr.msk.bf16.mxu1 %vm314_vm1, %v313_v18  ;;  %v306_v21 = vld [vmem:[%s401_s3 + $0x8] sm:$0xff]   ;;  %v308_v40 = vld [vmem:[%s401_s3 + $0x18] sm:$0xff]  }
   0x3   :  { %282 = vmatpush3.bf16.msra.mxu0 %v303_v17  ;;  %v305_v20 = vld [vmem:[%s401_s3] sm:$0xff]  }
   0x4   :  { %v31_v3 = vmul.f32 2.0, %v271_v1  ;;  %v32_v4 = vmul.f32 2.0, %v272_v2  ;;  %283 = vmatprep.subr.bf16.mxu0 %v313_v18  ;;  %290 = vmatpush3.bf16.msra.mxu1 %v305_v20  ;;  %v253_v30 = vld [vmem:[%s402_s5] ss:$0 sm:$0xff] }
   0x5   :  { %291 = vmatprep.subr.bf16.mxu1 %v313_v18  ;;  %v254_v34 = vld [vmem:[%s403_s6] ss:$0 sm:$0xff] }
   0x6   :  { %v36_v5 = vsel %vm35_vm0, %v31_v3, 0.0  ;;  %v39_v6 = vsel %vm35_vm0, %v32_v4, 0.0  ;;  %v255_v41 = vld [vmem:[%s404_s2] ss:$0 sm:$0xff] }
   0x7   :  { %37 = vadd.xlane.f32.xlu0 %v36_v5  ;;  %284 = vmatpush3.bf16.msra.mxu0 %v304_v19  ;;  %v264_v52 = vld [vmem:[%s405_s4] ss:$0 sm:$0xff] }
   0x8   :  { %292 = vmatpush3.bf16.msra.mxu1 %v306_v21 }
   0x9   :  { %293 = vmatprep.subr.bf16.mxu1 %v313_v18 }
   0xb   :  { %40 = vadd.xlane.f32.xlu0 %v39_v6 }
   0xc   :  { %294 = vmatpush3.bf16.msra.mxu1 %v307_v39 }
   0xd   :  { %295 = vmatprep.subr.bf16.mxu1 %v313_v18 }
  0x10   :  { %296 = vmatpush3.bf16.msra.mxu1 %v308_v40 }
  0x94   :  { %v38_v7 = vpop.xlane.xlu0 %37 }
  0x95   :  { %v43_v8 = vmul.f32 0.03125, %v38_v7 }
  0x97   :  { %v45_v9 = vsub.f32 %v31_v3, %v43_v8 }
  0x98   :  { %v41_v10 = vpop.xlane.xlu0 %40 }
  0x99   :  { %v44_v11 = vmul.f32 0.03125, %v41_v10  ;;  %v47_v12 = vmul.f32 %v45_v9, %v45_v9 }
  0x9b   :  { %v46_v13 = vsub.f32 %v32_v4, %v44_v11  ;;  %v49_v14 = vsel %vm35_vm0, %v47_v12, 0.0 }
  0x9c   :  { %50 = vadd.xlane.f32.xlu1 %v49_v14 }
  0x9d   :  { %v48_v15 = vmul.f32 %v46_v13, %v46_v13 }
  0x9f   :  { %v52_v16 = vsel %vm35_vm0, %v48_v15, 0.0 }
  0xa0   :  { %53 = vadd.xlane.f32.xlu1 %v52_v16 }
 0x129   :  { %v51_v22 = vpop.xlane.xlu1 %50 }
 0x12a   :  { %v55_v23 = vmul.f32 0.03125, %v51_v22 }
 0x12c   :  { %v57_v24 = vadd.f32 1e-05, %v55_v23 }
 0x12d   :  { %v54_v25 = vpop.xlane.xlu1 %53 }
 0x12e   :  { %309 = vrsqrt.f32 %v57_v24  ;;  %v56_v26 = vmul.f32 0.03125, %v54_v25 }
 0x130   :  { %v58_v27 = vadd.f32 1e-05, %v56_v26 }
 0x132   :  { %311 = vrsqrt.f32 %v58_v27 }
 0x138   :  { %v310_v28 = vpop.eup %309 }
 0x139   :  { %v61_v29 = vmul.f32 %v310_v28, %v45_v9 }
 0x13b   :  { %v69_v33 = vmul.f32 %v253_v30, %v61_v29 }
 0x13c   :  { %v312_v31 = vpop.eup %311 }
 0x13d   :  { %v62_v32 = vmul.f32 %v312_v31, %v46_v13  ;;  %v77_v36 = vadd.f32 %v254_v34, %v69_v33 }
 0x13f   :  { %v70_v35 = vmul.f32 %v253_v30, %v62_v32 }
 0x141   :  { %v78_v37 = vadd.f32 %v254_v34, %v70_v35 }
 0x143   :  { %v79_v38 = vpack.c.bf16 %v78_v37, %v77_v36 }
 0x145   :  { %286 = vmatmul.mubr.msk.bf16.vlgmr.msra.gmra.mrb[0].mxu0 %vm35_vm0, %v79_v38 }
 0x218   :  { %v140_v42 = vpop.f32.mrb[0].mxu0 }
 0x219   :  { %v141_v43 = vadd.f32 %v255_v41, %v140_v42  ;;  %v287_v44 = vpop.f32.mrb[1].mxu0 }
 0x21a   :  { %v143_v45 = vpop.f32.mrb[2].mxu0 }
 0x21b   :  { %v144_v46 = vadd.f32 %v255_v41, %v143_v45  ;;  %v288_v47 = vpop.f32.mrb[3].mxu0  ;;  %v147_v48 = vmax.f32 %v141_v43, 0.0 }
 0x21d   :  { %v148_v49 = vmax.f32 %v144_v46, 0.0 }
 0x21f   :  { %v149_v50 = vpack.c.bf16 %v148_v49, %v147_v48 }
 0x221   :  { %298 = vmatmul.mubr.msk.bf16.vlgmr.msra.gmra.mrb[0].mxu1 %vm182_vm2, %v149_v50 }
 0x2f4   :  { %v220_v51 = vpop.f32.mrb[0].mxu1 }
 0x2f5   :  { %v227_v53 = vadd.f32 %v220_v51, %v77_v36  ;;  %v299_v54 = vpop.f32.mrb[1].mxu1 }
 0x2f6   :  { %v223_v55 = vpop.f32.mrb[2].mxu1 }
 0x2f7   :  { %v236_v56 = vadd.f32 %v264_v52, %v227_v53  ;;  %v228_v57 = vadd.f32 %v223_v55, %v78_v37  ;;  %v300_v58 = vpop.f32.mrb[3].mxu1 }
 0x2f9   :  { %v267_v59 = vpack.c.bf16 %v236_v56, %v236_v56  ;;  %v237_v60 = vadd.f32 %v264_v52, %v228_v57 }
 0x2fb   :  { %247 = vst.msk [vmem:[%s406_s7] sm:$0xf] %vm246_vm3, %v267_v59  ;;  %v268_v61 = vpack.c.bf16 %v237_v60, %v237_v60 }
 0x2fd   :  { %248 = vst.msk [vmem:[%s406_s7 + $0x4] sm:$0xf] %vm246_vm3, %v268_v61 }

// kernel: transformer_forward.9
= control target key start
LH: loop header
LB: loop body
LE: loop exit
PB: predicated region body
PF: predicated region fallthrough
CT: control target
= control target key end

     0   :  { %s1629_s13 = smov 0   ;;  %s1631_s14 = smov 0   ;;  %s1796_s0 = inlined_call_operand.vmem [shape: bf16[2,16,32], index: 0, kind: input, shape index: {}]   ;;  %s1797_s1 = inlined_call_operand.vmem [shape: bf16[2,16,32], index: 1, kind: input, shape index: {}]   ;;  %s1798_s2 = inlined_call_operand.vmem [shape: bf16[32,64], index: 2, kind: input, shape index: {}]   ;;  %s1799_s3 = inlined_call_operand.vmem [shape: f32[1,64], index: 3, kind: input, shape index: {}]   ;;  %s1800_s4 = inlined_call_operand.vmem [shape: bf16[32,32], index: 4, kind: input, shape index: {}]   ;;  %s1801_s5 = inlined_call_operand.vmem [shape: f32[1,32], index: 5, kind: input, shape index: {}]   ;;  %s1802_s6 = inlined_call_operand.vmem [shape: bf16[32,32], index: 6, kind: input, shape index: {}]   ;;  %s1803_s7 = inlined_call_operand.vmem [shape: f32[1,32], index: 7, kind: input, shape index: {}]   ;;  %s1804_s8 = inlined_call_operand.vmem [shape: f32[1,32], index: 8, kind: input, shape index: {}]   ;;  %s1805_s9 = inlined_call_operand.vmem [shape: f32[1,32], index: 9, kind: input, shape index: {}]   ;;  %s1806_s10 = inlined_call_operand.vmem [shape: bf16[2,16,32], index: 10, kind: output, shape index: {}]  }
   0x1   :  { %s1633_s15 = smov 0  }
   0x2 LB: > { %s32_s16 = sadd.s32 1, %s1559_s14  ;;  %p1325_p0 = scmp.ge.s32.totalorder %s1563_s15, 1  ;;  %s1563_s15 = sphi %s1633_s15, %s20_s15   ;;  %s1559_s14 = sphi %s1631_s14, %s1808_s14   ;;  %s1555_s13 = sphi %s1629_s13, %s1807_s13  }
   0x3   : > { %p34_p1 = scmp.ge.s32.totalorder %s32_s16, 2  ;;  %p336_p2 = scmp.lt.s32.totalorder %s1563_s15, 3 }
   0x5   : > { %s1810_s16 = smov (%p34_p1, %s32_s16), 0  ;;  %p337_p3 = pnand %p1325_p0, %p336_p2 }
   0x6   : > { %v1499_v0 = vld [vmem:[%s1798_s2] sm:$0xff] (!%p337_p3)   ;;  %v1565_v1 = vmov (!%p337_p3), 0.0   ;;  %v1500_v2 = vld [vmem:[%s1798_s2 + $0x8] sm:$0xff] (!%p337_p3)   ;;  %vm1566_vm0 = vmmov (!%p337_p3), 0   ;;  %p383_p4 = scmp.lt.s32.totalorder (!%p337_p3), %s1555_s13, 1  ;;  %vm442_vm1 = vcmask (!%p337_p3), 261120  }
   0x7   : > { %340 = sbr.rel (%p337_p3) target bundleno = 1953 (0x7a1), region = 60  ;;  %1394 = vmatprep.subr.bf16.mxu0 (!%p337_p3), %v1565_v1  ;;  %1402 = vmatprep.subr.bf16.mxu1 (!%p337_p3), %v1565_v1  ;;  %v1332_v10 = vld [vmem:[%s1799_s3] ss:$0 sm:$0xff] (!%p337_p3)  ;;  %s1567_s30 = smov (!%p337_p3), 96   ;;  %vm576_vm2 = vcmask (!%p337_p3), 64512   ;;  %v1502_v23 = vld [vmem:[%s1800_s4 + $0x8] sm:$0xff] (!%p337_p3)  }
   0x8   : > { %1395 = vmatpush3.bf16.msra.mxu0 (!%p337_p3), %v1499_v0  ;;  %1398 = vmatprep.mubr.msk.bf16.mxu0 (!%p337_p3), %vm1566_vm0, %v1565_v1  ;;  %s1568_s11 = smov (!%p337_p3), 120   ;;  %s1569_s12 = smov (!%p337_p3), 112   ;;  %v1501_v22 = vld [vmem:[%s1800_s4] sm:$0xff] (!%p337_p3)   ;;  %vm626_vm3 = vcmask (!%p337_p3), 130048   ;;  %vm827_vm4 = vcmask (!%p337_p3), 130112   ;;  %vm957_vm5 = vcmask (!%p337_p3), 195712  }
   0x9   : > { %1396 = vmatprep.subr.bf16.mxu0 (!%p337_p3), %v1565_v1  ;;  %1406 = vmatprep.mubr.msk.bf16.mxu1 (!%p337_p3), %vm1566_vm0, %v1565_v1  ;;  %s1571_s25 = smov (!%p337_p3), 8   ;;  %s1572_s26 = smov (!%p337_p3), 16   ;;  %vm1087_vm6 = vcmask (!%p337_p3), 261312   ;;  %vm1221_vm7 = vcmask (!%p337_p3), 257024  }
   0xa   : > { %1403 = vmatpush3.bf16.msra.mxu1 (!%p337_p3), %v1501_v22 }
   0xb   : > { %1404 = vmatprep.subr.bf16.mxu1 (!%p337_p3), %v1565_v1 }
   0xc   : > { %1397 = vmatpush3.bf16.msra.mxu0 (!%p337_p3), %v1500_v2 }
   0xd   : > { %1410 = vmatprep.subr.bf16.mxu0 (!%p337_p3), %v1565_v1 }
   0xe   : > { %s1812_s13 = smov (!%p383_p4, %s1555_s13), 1  ;;  %1405 = vmatpush3.bf16.msra.mxu1 %v1502_v23 }
   0xf   : > { %s1660_s21 = sshll.u32 %s1812_s13, 3  ;;  %s1570_s13 = smov 104   ;;  %1416 = vmatprep.subr.bf16.mxu1 %v1565_v1 }
  0x10   : > { %s1666_s24 = scalar_lea.vmem %s1796_s0, %s1660_s21  ;;  %s392_s27 = scalar_lea.vmem %s1797_s1, %s1660_s21 }
  0x11   : > { %v408_v3 = vld [vmem:[%s1666_s24] sm:$0xf]  ;;  %v409_v4 = vld [vmem:[%s1666_s24 + $0x4] sm:$0xf]  ;;  %s401_s23 = scalar_lea.vmem %s1806_s10, %s1660_s21 }
  0x12   : > { %v410_v5 = vld [vmem:[%s392_s27] sm:$0xf]  ;;  %v411_v6 = vld [vmem:[%s392_s27 + $0x4] sm:$0xf]  ;;  %v1338_v24 = vcombine.low %v408_v3, %v409_v4 }
  0x13   : > { %v412_v7 = vadd.bf16 %v410_v5, %v408_v3  ;;  %v413_v8 = vadd.bf16 %v411_v6, %v409_v4 }
  0x14   : > { %1407 = vmatmul.mubr.msk.bf16.vlgmr.msra.gmra.mrb[0].mxu1 %vm442_vm1, %v1338_v24 }
  0x15   : > { %v1333_v9 = vcombine.low %v412_v7, %v413_v8  ;;  %1418 = vmatprep.mubr.msk.bf16.mxu1 %vm1566_vm0, %v1565_v1 }
  0x17   : > { %1399 = vmatmul.mubr.msk.bf16.vlgmr.msra.gmra.mrb[0].mxu0 %vm442_vm1, %v1333_v9  ;;  %v1337_v9 = vld [vmem:[%s1801_s5] ss:$0 sm:$0xff] }
  0x18   : > { %1412 = vmatprep.mubr.msk.bf16.mxu0 %vm1566_vm0, %v1565_v1 }
  0xea   : > { %v480_v11 = vpop.f32.mrb[0].mxu0 }
  0xeb   : > { %v1400_v12 = vpop.f32.mrb[1].mxu0  ;;  %v481_v14 = vadd.f32 %v1332_v10, %v480_v11 }
  0xec   : > { %v483_v13 = vpop.f32.mrb[2].mxu0 }
  0xed   : > { %v484_v15 = vadd.f32 %v1332_v10, %v483_v13  ;;  %v1401_v16 = vpop.f32.mrb[3].mxu0  ;;  %v552_v10 = vpop.f32.mrb[0].mxu1 }
  0xee   : > { %v553_v11 = vadd.f32 %v1337_v9, %v552_v10  ;;  %v1408_v12 = vpop.f32.mrb[1].mxu1 }
  0xef   : > { %v559_v17 = vpack.c.bf16 %v484_v15, %v481_v14  ;;  %v555_v13 = vpop.f32.mrb[2].mxu1 }
  0xf0   : > { %v556_v15 = vadd.f32 %v1337_v9, %v555_v13  ;;  %v1409_v16 = vpop.f32.mrb[3].mxu1 }
  0xf1   : > { %562 = vrot.lane.b32.xlu0 %v559_v17, %s1567_s30  ;;  %560 = vst.msk [vmem:[#allocation2] sm:$0xff] %vm442_vm1, %v559_v17 }
  0xf8   : > { %v573_v18 = vld [vmem:[#allocation2] sm:$0xff] }
  0xf9   : > { %697 = vrot.lane.b32.xlu1 %v573_v18, %s1568_s11 }
 0x163   : > { %v563_v19 = vpop.permute.xlu0 %562 }
 0x164   : > { %565 = vst.msk [vmem:[#allocation3] sm:$0xff] %vm442_vm1, %v563_v19  ;;  %v566_v19 = vpack.c.bf16 %v556_v15, %v553_v11 }
 0x166   : > { %567 = vst.msk [vmem:[#allocation4] sm:$0xff] %vm442_vm1, %v566_v19 }
 0x16b   : > { %v574_v20 = vld [vmem:[#allocation3] sm:$0xff]  ;;  %v698_v27 = vpop.permute.xlu1 %697 }
 0x16c   : > { %700 = vrot.lane.b32.xlu0 %v574_v20, %s1568_s11  ;;  %831 = vrot.lane.b32.xlu1 %v574_v20, %s1569_s12  ;;  %v581_v21 = vsel %vm576_vm2, %v574_v20, 0 }
 0x16d   : > { %1411 = vmatpush3.bf16.xpose.msra.mxu0 %v581_v21  ;;  %v575_v21 = vld [vmem:[#allocation4] sm:$0xff] }
 0x16e   : > { %1422 = vmatprep.subr.bf16.mxu0 %v1565_v1  ;;  %1417 = vmatpush3.bf16.msra.mxu1 %v575_v21 }
 0x16f   : > { %1428 = vmatprep.subr.bf16.mxu1 %v1565_v1 }
 0x170   : > { %829 = vrot.lane.b32.xlu0 %v573_v18, %s1569_s12  ;;  %961 = vrot.lane.b32.xlu1 %v574_v20, %s1570_s13 }
 0x174   : > { %959 = vrot.lane.b32.xlu0 %v573_v18, %s1570_s13  ;;  %1413 = vmatmul.mubr.msk.bf16.vlgmr.msra.gmra.mrb[4].mxu0 %vm576_vm2, %v573_v18 }
 0x175   : > { %1424 = vmatprep.mubr.msk.bf16.mxu0 %vm1566_vm0, %v1565_v1 }
 0x1de   : > { %v701_v25 = vpop.permute.xlu0 %700  ;;  %v832_v28 = vpop.permute.xlu1 %831 }
 0x1df   : > { %v706_v26 = vsel %vm576_vm2, %v701_v25, 0  ;;  %v837_v29 = vsel %vm576_vm2, %v832_v28, 0 }
 0x1e0   : > { %1423 = vmatpush3.bf16.xpose.msra.mxu0 %v706_v26 }
 0x1e1   : > { %1434 = vmatprep.subr.bf16.mxu0 %v1565_v1 }
 0x1e2   : > { %v962_v30 = vpop.permute.xlu1 %961  ;;  %v830_v31 = vpop.permute.xlu0 %829 }
 0x1e3   : > { %v967_v32 = vsel %vm576_vm2, %v962_v30, 0 }
 0x1e6   : > { %v960_v33 = vpop.permute.xlu0 %959 }
 0x1e7   : > { %1425 = vmatmul.mubr.msk.bf16.vlgmr.msra.gmra.mrb[8].mxu0 %vm576_vm2, %v698_v27 }
 0x1e8   : > { %1435 = vmatpush3.bf16.xpose.msra.mxu0 %v837_v29  ;;  %1436 = vmatprep.mubr.msk.bf16.mxu0 %vm1566_vm0, %v1565_v1 }
 0x1e9   : > { %1446 = vmatprep.subr.bf16.mxu0 %v1565_v1 }
 0x1ef   : > { %1437 = vmatmul.mubr.msk.bf16.vlgmr.msra.gmra.mrb[12].mxu0 %vm576_vm2, %v830_v31 }
 0x1f0   : > { %1447 = vmatpush3.bf16.xpose.msra.mxu0 %v967_v32  ;;  %1448 = vmatprep.mubr.msk.bf16.mxu0 %vm1566_vm0, %v1565_v1 }
 0x1f1   : > { %1458 = vmatprep.subr.bf16.mxu0 %v1565_v1 }
 0x1f7   : > { %1449 = vmatmul.mubr.msk.bf16.vlgmr.msra.gmra.mrb[16].mxu0 %vm576_vm2, %v960_v33 }
 0x1f8   : > { %1462 = vmatprep.mubr.msk.bf16.mxu0 %vm1566_vm0, %v1565_v1 }
 0x247   : > { %v617_v34 = vpop.f32.mrb[4].mxu0 }
 0x248   : > { %v624_v35 = vmul.f32 0.35355338, %v617_v34  ;;  %v1414_v36 = vpop.f32.mrb[5].mxu0 }
 0x249   : > { %v620_v37 = vpop.f32.mrb[6].mxu0 }
 0x24a   : > { %v625_v38 = vmul.f32 0.35355338, %v620_v37  ;;  %v1415_v39 = vpop.f32.mrb[7].mxu0  ;;  %v627_v40 = vsel %vm626_vm3, %v624_v35, -inf }
 0x24b   : > { %628 = vmax.xlane.f32.xlu1 %v627_v40 }
 0x24c   : > { %v630_v41 = vsel %vm626_vm3, %v625_v38, -inf }
 0x24d   : > { %631 = vmax.xlane.f32.xlu0 %v630_v41 }
 0x2ba   : > { %v742_v42 = vpop.f32.mrb[8].mxu0 }
 0x2bb   : > { %v749_v43 = vmul.f32 0.35355338, %v742_v42  ;;  %v1426_v44 = vpop.f32.mrb[9].mxu0 }
 0x2bc   : > { %v745_v45 = vpop.f32.mrb[10].mxu0 }
 0x2bd   : > { %v750_v46 = vmul.f32 0.35355338, %v745_v45  ;;  %v1427_v47 = vpop.f32.mrb[11].mxu0  ;;  %v751_v48 = vsel %vm626_vm3, %v749_v43, -inf }
 0x2be   : > { %752 = vmax.xlane.f32.xlu0 %v751_v48 }
 0x2bf   : > { %v754_v49 = vsel %vm626_vm3, %v750_v46, -inf }
 0x2c0   : > { %755 = vmax.xlane.f32.xlu1 %v754_v49 }
 0x2c2   : > { %v873_v50 = vpop.f32.mrb[12].mxu0 }
 0x2c3   : > { %v880_v51 = vmul.f32 0.35355338, %v873_v50  ;;  %v1438_v52 = vpop.f32.mrb[13].mxu0 }
 0x2c4   : > { %v876_v53 = vpop.f32.mrb[14].mxu0 }
 0x2c5   : > { %v881_v54 = vmul.f32 0.35355338, %v876_v53  ;;  %v1439_v55 = vpop.f32.mrb[15].mxu0  ;;  %v882_v56 = vsel %vm626_vm3, %v880_v51, -inf }
 0x2c6   : > { %883 = vmax.xlane.f32.xlu0 %v882_v56 }
 0x2c7   : > { %v885_v57 = vsel %vm626_vm3, %v881_v54, -inf }
 0x2c8   : > { %886 = vmax.xlane.f32.xlu1 %v885_v57 }
 0x2ca   : > { %v1003_v58 = vpop.f32.mrb[16].mxu0 }
 0x2cb   : > { %v1010_v59 = vmul.f32 0.35355338, %v1003_v58  ;;  %v1450_v60 = vpop.f32.mrb[17].mxu0 }
 0x2cc   : > { %v1006_v61 = vpop.f32.mrb[18].mxu0 }
 0x2cd   : > { %v1726_v62 = vmul.f32 0.35355338, %v1006_v61  ;;  %v1451_v63 = vpop.f32.mrb[19].mxu0  ;;  %v1012_v0 = vsel %vm626_vm3, %v1010_v59, -inf }
 0x2ce   : > { %1013 = vmax.xlane.f32.xlu0 %v1012_v0 }
 0x2cf   : > { %v1015_v2 = vsel %vm626_vm3, %v1726_v62, -inf }
 0x2d0   : > { %1016 = vmax.xlane.f32.xlu1 %v1015_v2 }
 0x2d8   : > { %v629_v3 = vpop.xlane.xlu1 %628 }
 0x2d9   : > { %v633_v4 = vsub.f32 %v624_v35, %v629_v3 }
 0x2da   : > { %v632_v5 = vpop.xlane.xlu0 %631 }
 0x2db   : > { %v635_v6 = vmul.f32 1.442695, %v633_v4  ;;  %v634_v7 = vsub.f32 %v625_v38, %v632_v5 }
 0x2dd   : > { %1505 = vpow2.f32 %v635_v6  ;;  %v637_v8 = vmul.f32 1.442695, %v634_v7 }
 0x2df   : > { %1507 = vpow2.f32 %v637_v8 }
 0x2e7   : > { %v1506_v14 = vpop.eup %1505 }
 0x2e8   : > { %v639_v17 = vsel %vm626_vm3, %v1506_v14, 0.0 }
 0x2e9   : > { %v1508_v18 = vpop.eup %1507  ;;  %640 = vadd.xlane.f32.xlu0 %v639_v17 }
 0x2ea   : > { %v642_v20 = vsel %vm626_vm3, %v1508_v18, 0.0 }
 0x2eb   : > { %643 = vadd.xlane.f32.xlu1 %v642_v20 }
 0x34b   : > { %v753_v22 = vpop.xlane.xlu0 %752 }
 0x34c   : > { %v757_v23 = vsub.f32 %v749_v43, %v753_v22 }
 0x34d   : > { %v756_v24 = vpop.xlane.xlu1 %755 }
 0x34e   : > { %v759_v25 = vmul.f32 1.442695, %v757_v23  ;;  %v758_v26 = vsub.f32 %v750_v46, %v756_v24 }
 0x350   : > { %1509 = vpow2.f32 %v759_v25  ;;  %v761_v27 = vmul.f32 1.442695, %v758_v26 }
 0x352   : > { %1511 = vpow2.f32 %v761_v27 }
 0x353   : > { %v884_v28 = vpop.xlane.xlu0 %883 }
 0x354   : > { %v888_v29 = vsub.f32 %v880_v51, %v884_v28 }
 0x355   : > { %v887_v30 = vpop.xlane.xlu1 %886 }
 0x356   : > { %v890_v31 = vmul.f32 1.442695, %v888_v29  ;;  %v889_v32 = vsub.f32 %v881_v54, %v887_v30 }
 0x358   : > { %1513 = vpow2.f32 %v890_v31  ;;  %v892_v33 = vmul.f32 1.442695, %v889_v32 }
 0x35a   : > { %v1510_v34 = vpop.eup %1509  ;;  %1515 = vpow2.f32 %v892_v33 }
 0x35b   : > { %v1014_v35 = vpop.xlane.xlu0 %1013  ;;  %v763_v36 = vsel %vm626_vm3, %v1510_v34, 0.0 }
 0x35c   : > { %v1512_v37 = vpop.eup %1511  ;;  %v1018_v38 = vsub.f32 %v1010_v59, %v1014_v35  ;;  %764 = vadd.xlane.f32.xlu0 %v763_v36  ;;  %v1503_v35 = vld [vmem:[%s1802_s6] sm:$0xff]   ;;  %v1504_v36 = vld [vmem:[%s1802_s6 + $0x8] sm:$0xff]  }
 0x35d   : > { %v766_v39 = vsel %vm626_vm3, %v1512_v37, 0.0  ;;  %v1017_v47 = vpop.xlane.xlu1 %1016  ;;  %1459 = vmatpush3.bf16.msra.mxu0 %v1503_v35 }
 0x35e   : > { %v1020_v40 = vmul.f32 1.442695, %v1018_v38  ;;  %767 = vadd.xlane.f32.xlu1 %v766_v39  ;;  %v1019_v54 = vsub.f32 %v1726_v62, %v1017_v47  ;;  %1460 = vmatprep.subr.bf16.mxu0 %v1565_v1 }
 0x360   : > { %1517 = vpow2.f32 %v1020_v40  ;;  %v1022_v56 = vmul.f32 1.442695, %v1019_v54 }
 0x361   : > { %1461 = vmatpush3.bf16.msra.mxu0 %v1504_v36 }
 0x362   : > { %v1514_v41 = vpop.eup %1513 }
 0x363   : > { %v894_v42 = vsel %vm626_vm3, %v1514_v41, 0.0 }
 0x364   : > { %v1516_v43 = vpop.eup %1515  ;;  %895 = vadd.xlane.f32.xlu0 %v894_v42 }
 0x365   : > { %v897_v44 = vsel %vm626_vm3, %v1516_v43, 0.0 }
 0x366   : > { %898 = vadd.xlane.f32.xlu1 %v897_v44 }
 0x36a   : > { %v1518_v45 = vpop.eup %1517 }
 0x36b   : > { %v1024_v46 = vsel %vm626_vm3, %v1518_v45, 0.0 }
 0x36c   : > { %1025 = vadd.xlane.f32.xlu0 %v1024_v46  ;;  %v1350_v46 = vld [vmem:[%s1803_s7] ss:$0 sm:$0xff] }
 0x376   : > { %v641_v48 = vpop.xlane.xlu0 %640 }
 0x377   : > { %1519 = vrcp.f32 %v641_v48  ;;  %905 = vrot.lane.b32.xlu1 %v575_v21, %s1569_s12 }
 0x378   : > { %v644_v49 = vpop.xlane.xlu1 %643 }
 0x379   : > { %1521 = vrcp.f32 %v644_v49 }
 0x37a   : > { %1523 = vpow2.f32 %v1022_v56 }
 0x381   : > { %v1520_v50 = vpop.eup %1519 }
 0x382   : > { %775 = vrot.lane.b32.xlu0 %v575_v21, %s1568_s11  ;;  %v646_v52 = vmul.f32 %v1520_v50, %v1506_v14  ;;  %s1573_s11 = smov 24  }
 0x383   : > { %v1522_v51 = vpop.eup %1521 }
 0x384   : > { %v648_v53 = vmul.f32 %v1522_v51, %v1508_v18  ;;  %v1524_v57 = vpop.eup %1523 }
 0x385   : > { %v1027_v58 = vsel %vm626_vm3, %v1524_v57, 0.0 }
 0x386   : > { %v649_v55 = vpack.c.bf16 %v648_v53, %v646_v52 }
 0x388   : > { %1419 = vmatmul.mubr.msk.bf16.vlgmr.msra.gmra.mrb[4].mxu1 %vm626_vm3, %v649_v55 }
 0x389   : > { %1430 = vmatprep.mubr.msk.bf16.mxu1 %vm1566_vm0, %v1565_v1 }
 0x39b   : > { %1028 = vadd.xlane.f32.xlu1 %v1027_v58 }
 0x3ac   : > { %1035 = vrot.lane.b32.xlu1 %v575_v21, %s1570_s13 }
 0x3e9   : > { %v765_v60 = vpop.xlane.xlu0 %764 }
 0x3eb   : > { %v768_v59 = vpop.xlane.xlu1 %767 }
 0x3ec   : > { %1525 = vrcp.f32 %v768_v59 }
 0x3ed   : > { %1527 = vrcp.f32 %v765_v60 }
 0x3f1   : > { %v896_v62 = vpop.xlane.xlu0 %895 }
 0x3f3   : > { %v899_v61 = vpop.xlane.xlu1 %898 }
 0x3f4   : > { %1529 = vrcp.f32 %v899_v61 }
 0x3f5   : > { %1531 = vrcp.f32 %v896_v62 }
 0x3f6   : > { %v1526_v63 = vpop.eup %1525 }
 0x3f7   : > { %v1528_v2 = vpop.eup %1527  ;;  %v772_v3 = vmul.f32 %v1526_v63, %v1512_v37  ;;  %v906_v8 = vpop.permute.xlu1 %905 }
 0x3f8   : > { %v770_v4 = vmul.f32 %v1528_v2, %v1510_v34 }
 0x3f9   : > { %v1026_v0 = vpop.xlane.xlu0 %1025 }
 0x3fa   : > { %v773_v6 = vpack.c.bf16 %v772_v3, %v770_v4  ;;  %1533 = vrcp.f32 %v1026_v0 }
 0x3fd   : > { %v776_v5 = vpop.permute.xlu0 %775 }
 0x3fe   : > { %1429 = vmatpush3.bf16.msra.mxu1 %v776_v5  ;;  %v1530_v7 = vpop.eup %1529 }
 0x3ff   : > { %1440 = vmatprep.subr.bf16.mxu1 %v1565_v1  ;;  %v1532_v9 = vpop.eup %1531  ;;  %v903_v10 = vmul.f32 %v1530_v7, %v1516_v43 }
 0x400   : > { %v901_v11 = vmul.f32 %v1532_v9, %v1514_v41 }
 0x401   : > { %1431 = vmatmul.mubr.msk.bf16.vlgmr.msra.gmra.mrb[8].mxu1 %vm626_vm3, %v773_v6 }
 0x402   : > { %1441 = vmatpush3.bf16.msra.mxu1 %v906_v8  ;;  %1442 = vmatprep.mubr.msk.bf16.mxu1 %vm1566_vm0, %v1565_v1  ;;  %v904_v12 = vpack.c.bf16 %v903_v10, %v901_v11 }
 0x403   : > { %1452 = vmatprep.subr.bf16.mxu1 %v1565_v1 }
 0x404   : > { %v1534_v15 = vpop.eup %1533 }
 0x405   : > { %v1031_v17 = vmul.f32 %v1534_v15, %v1518_v45 }
 0x409   : > { %1443 = vmatmul.mubr.msk.bf16.vlgmr.msra.gmra.mrb[12].mxu1 %vm626_vm3, %v904_v12 }
 0x40a   : > { %1454 = vmatprep.mubr.msk.bf16.mxu1 %vm1566_vm0, %v1565_v1  ;;  %v1366_v1 = vld [vmem:[%s1666_s24] sm:$0xff]  }
 0x40b   : > { %v1367_v47 = vunpack.c.l.bf16 %v1366_v1  ;;  %v1368_v51 = vunpack.c.h.bf16 %v1366_v1 }
 0x428   : > { %v1029_v13 = vpop.xlane.xlu1 %1028 }
 0x429   : > { %1535 = vrcp.f32 %v1029_v13  ;;  %v1354_v13 = vld [vmem:[%s1804_s8] ss:$0 sm:$0xff] }
 0x42c   : > { %v1036_v14 = vpop.permute.xlu1 %1035 }
 0x42d   : > { %1453 = vmatpush3.bf16.msra.mxu1 %v1036_v14 }
 0x433   : > { %v1536_v16 = vpop.eup %1535 }
 0x434   : > { %v1033_v18 = vmul.f32 %v1536_v16, %v1524_v57  ;;  %v1355_v16 = vld [vmem:[%s1805_s9] ss:$0 sm:$0xff] }
 0x436   : > { %v1034_v19 = vpack.c.bf16 %v1033_v18, %v1031_v17 }
 0x438   : > { %1455 = vmatmul.mubr.msk.bf16.vlgmr.msra.gmra.mrb[16].mxu1 %vm626_vm3, %v1034_v19 }
 0x45b   : > { %v687_v20 = vpop.f32.mrb[4].mxu1 }
 0x45c   : > { %v1420_v21 = vpop.f32.mrb[5].mxu1 }
 0x45d   : > { %v690_v22 = vpop.f32.mrb[6].mxu1 }
 0x45e   : > { %v694_v23 = vpack.c.bf16 %v690_v22, %v687_v20  ;;  %v1421_v24 = vpop.f32.mrb[7].mxu1 }
 0x460   : > { %695 = vst.msk [vmem:[#allocation5] sm:$0xff] %vm576_vm2, %v694_v23 }
 0x4d4   : > { %v815_v25 = vpop.f32.mrb[8].mxu1 }
 0x4d5   : > { %v1432_v26 = vpop.f32.mrb[9].mxu1 }
 0x4d6   : > { %v818_v27 = vpop.f32.mrb[10].mxu1 }
 0x4d7   : > { %v822_v28 = vpack.c.bf16 %v818_v27, %v815_v25  ;;  %v1433_v29 = vpop.f32.mrb[11].mxu1 }
 0x4d9   : > { %824 = vrot.lane.b32.xlu0 %v822_v28, %s1571_s25 }
 0x4dc   : > { %v945_v30 = vpop.f32.mrb[12].mxu1 }
 0x4dd   : > { %v1444_v31 = vpop.f32.mrb[13].mxu1 }
 0x4de   : > { %v948_v32 = vpop.f32.mrb[14].mxu1 }
 0x4df   : > { %v952_v33 = vpack.c.bf16 %v948_v32, %v945_v30  ;;  %v1445_v34 = vpop.f32.mrb[15].mxu1 }
 0x4e1   : > { %954 = vrot.lane.b32.xlu1 %v952_v33, %s1572_s26 }
 0x50b   : > { %v1075_v37 = vpop.f32.mrb[16].mxu1 }
 0x50c   : > { %v1456_v38 = vpop.f32.mrb[17].mxu1 }
 0x50d   : > { %v1078_v39 = vpop.f32.mrb[18].mxu1 }
 0x50e   : > { %v1082_v40 = vpack.c.bf16 %v1078_v39, %v1075_v37  ;;  %v1457_v41 = vpop.f32.mrb[19].mxu1 }
 0x510   : > { %1084 = vrot.lane.b32.xlu0 %v1082_v40, %s1573_s11 }
 0x54b   : > { %v825_v42 = vpop.permute.xlu0 %824 }
 0x54c   : > { %828 = vst.msk [vmem:[#allocation5] sm:$0xff] %vm827_vm4, %v825_v42 }
 0x553   : > { %v955_v43 = vpop.permute.xlu1 %954 }
 0x554   : > { %958 = vst.msk [vmem:[#allocation5] sm:$0xff] %vm957_vm5, %v955_v43 }
 0x582   : > { %v1085_v44 = vpop.permute.xlu0 %1084 }
 0x583   : > { %1088 = vst.msk [vmem:[#allocation5] sm:$0xff] %vm1087_vm6, %v1085_v44 }
 0x58a   : > { %v1089_v45 = vld [vmem:[#allocation5] sm:$0xff] }
 0x58b   : > { %1463 = vmatmul.mubr.msk.bf16.vlgmr.msra.gmra.mrb[20].mxu0 %vm442_vm1, %v1089_v45 }
 0x65e   : > { %v1151_v48 = vpop.f32.mrb[20].mxu0 }
 0x65f   : > { %v1152_v49 = vadd.f32 %v1350_v46, %v1151_v48  ;;  %v1464_v50 = vpop.f32.mrb[21].mxu0 }
 0x660   : > { %v1154_v52 = vpop.f32.mrb[22].mxu0 }
 0x661   : > { %v1155_v53 = vadd.f32 %v1350_v46, %v1154_v52  ;;  %v1465_v54 = vpop.f32.mrb[23].mxu0  ;;  %v1166_v55 = vadd.f32 %v1367_v47, %v1152_v49 }
 0x663   : > { %v1170_v56 = vsel %vm442_vm1, %v1166_v55, 0.0  ;;  %v1167_v57 = vadd.f32 %v1368_v51, %v1155_v53 }
 0x664   : > { %1171 = vadd.xlane.f32.xlu1 %v1170_v56 }
 0x665   : > { %v1173_v58 = vsel %vm442_vm1, %v1167_v57, 0.0 }
 0x666   : > { %1174 = vadd.xlane.f32.xlu0 %v1173_v58 }
 0x6f1   : > { %v1172_v59 = vpop.xlane.xlu1 %1171 }
 0x6f2   : > { %v1177_v60 = vmul.f32 0.03125, %v1172_v59 }
 0x6f3   : > { %v1175_v61 = vpop.xlane.xlu0 %1174 }
 0x6f4   : > { %v1179_v62 = vsub.f32 %v1166_v55, %v1177_v60  ;;  %v1178_v63 = vmul.f32 0.03125, %v1175_v61 }
 0x6f6   : > { %v1180_v0 = vsub.f32 %v1167_v57, %v1178_v63  ;;  %v1181_v2 = vmul.f32 %v1179_v62, %v1179_v62 }
 0x6f8   : > { %v1183_v3 = vsel %vm442_vm1, %v1181_v2, 0.0  ;;  %v1182_v4 = vmul.f32 %v1180_v0, %v1180_v0 }
 0x6f9   : > { %1184 = vadd.xlane.f32.xlu0 %v1183_v3 }
 0x6fa   : > { %v1186_v5 = vsel %vm442_vm1, %v1182_v4, 0.0 }
 0x6fb   : > { %1187 = vadd.xlane.f32.xlu1 %v1186_v5 }
 0x786   : > { %v1185_v6 = vpop.xlane.xlu0 %1184 }
 0x787   : > { %v1189_v7 = vmul.f32 0.03125, %v1185_v6 }
 0x788   : > { %v1188_v8 = vpop.xlane.xlu1 %1187 }
 0x789   : > { %v1191_v9 = vadd.f32 1e-05, %v1189_v7  ;;  %v1190_v10 = vmul.f32 0.03125, %v1188_v8 }
 0x78b   : > { %1537 = vrsqrt.f32 %v1191_v9  ;;  %v1192_v11 = vadd.f32 1e-05, %v1190_v10 }
 0x78d   : > { %1539 = vrsqrt.f32 %v1192_v11 }
 0x795   : > { %v1538_v12 = vpop.eup %1537 }
 0x796   : > { %v1195_v14 = vmul.f32 %v1538_v12, %v1179_v62 }
 0x797   : > { %v1540_v15 = vpop.eup %1539 }
 0x798   : > { %v1203_v17 = vmul.f32 %v1354_v13, %v1195_v14  ;;  %v1196_v18 = vmul.f32 %v1540_v15, %v1180_v0 }
 0x79a   : > { %v1211_v19 = vadd.f32 %v1355_v16, %v1203_v17  ;;  %v1204_v20 = vmul.f32 %v1354_v13, %v1196_v18 }
 0x79c   : > { %v1363_v21 = vpack.c.bf16 %v1211_v19, %v1211_v19  ;;  %v1212_v22 = vadd.f32 %v1355_v16, %v1204_v20 }
 0x79e   : > { %1222 = vst.msk [vmem:[%s401_s23] sm:$0xf] %vm1221_vm7, %v1363_v21  ;;  %v1364_v23 = vpack.c.bf16 %v1212_v22, %v1212_v22 }
 0x7a0   : > { %1223 = vst.msk [vmem:[%s401_s23 + $0x4] sm:$0xf] %vm1221_vm7, %v1364_v23 }
 0x7a1 PF: > { %s20_s15 = sadd.s32 1, %s1563_s15   ;;  %s1807_s13 = smov %s1559_s14 }
 0x7a2   : > { %p17_p5 = scmp.ge.s32.totalorder %s20_s15, 4   ;;  %s1808_s14 = smov %s1810_s16 }
 0x7a4   :  { %19 = sbr.rel (!%p17_p5) target bundleno = 2 (0x2), region = 99 }

// kernel: transformer_forward.17
= control target key start
LH: loop header
LB: loop body
LE: loop exit
PB: predicated region body
PF: predicated region fallthrough
CT: control target
= control target key end

     0   :  { %vm20_vm0 = vcmask 261120   ;;  %vm72_vm1 = vcmask 257024   ;;  %s132_s0 = inlined_call_operand.vmem [shape: bf16[16,32], index: 0, kind: input, shape index: {}]   ;;  %s133_s1 = inlined_call_operand.vmem [shape: f32[1,32], index: 1, kind: input, shape index: {}]   ;;  %s134_s2 = inlined_call_operand.vmem [shape: f32[1,32], index: 2, kind: input, shape index: {}]   ;;  %s135_s3 = inlined_call_operand.vmem [shape: bf16[16,32], index: 3, kind: output, shape index: {}]  }
   0x1   :  { %v86_v0 = vld [vmem:[%s132_s0] sm:$0xff]  }
   0x2   :  { %v87_v1 = vunpack.c.l.bf16 %v86_v0  ;;  %v88_v2 = vunpack.c.h.bf16 %v86_v0  ;;  %v79_v22 = vld [vmem:[%s133_s1] ss:$0 sm:$0xff] }
   0x3   :  { %v80_v24 = vld [vmem:[%s134_s2] ss:$0 sm:$0xff] }
   0x4   :  { %v21_v3 = vsel %vm20_vm0, %v87_v1, 0.0  ;;  %v24_v4 = vsel %vm20_vm0, %v88_v2, 0.0 }
   0x5   :  { %22 = vadd.xlane.f32.xlu0 %v21_v3 }
   0x9   :  { %25 = vadd.xlane.f32.xlu0 %v24_v4 }
  0x92   :  { %v23_v5 = vpop.xlane.xlu0 %22 }
  0x93   :  { %v28_v6 = vmul.f32 0.03125, %v23_v5 }
  0x95   :  { %v30_v7 = vsub.f32 %v87_v1, %v28_v6 }
  0x96   :  { %v26_v8 = vpop.xlane.xlu0 %25 }
  0x97   :  { %v29_v9 = vmul.f32 0.03125, %v26_v8  ;;  %v32_v10 = vmul.f32 %v30_v7, %v30_v7 }
  0x99   :  { %v31_v11 = vsub.f32 %v88_v2, %v29_v9  ;;  %v34_v12 = vsel %vm20_vm0, %v32_v10, 0.0 }
  0x9a   :  { %35 = vadd.xlane.f32.xlu1 %v34_v12 }
  0x9b   :  { %v33_v13 = vmul.f32 %v31_v11, %v31_v11 }
  0x9d   :  { %v37_v14 = vsel %vm20_vm0, %v33_v13, 0.0 }
  0x9e   :  { %38 = vadd.xlane.f32.xlu1 %v37_v14 }
 0x127   :  { %v36_v15 = vpop.xlane.xlu1 %35 }
 0x128   :  { %v40_v16 = vmul.f32 0.03125, %v36_v15 }
 0x12a   :  { %v42_v17 = vadd.f32 1e-05, %v40_v16 }
 0x12b   :  { %v39_v18 = vpop.xlane.xlu1 %38 }
 0x12c   :  { %89 = vrsqrt.f32 %v42_v17  ;;  %v41_v19 = vmul.f32 0.03125, %v39_v18 }
 0x12e   :  { %v43_v20 = vadd.f32 1e-05, %v41_v19 }
 0x130   :  { %91 = vrsqrt.f32 %v43_v20 }
 0x136   :  { %v90_v21 = vpop.eup %89 }
 0x137   :  { %v46_v23 = vmul.f32 %v90_v21, %v30_v7 }
 0x139   :  { %v54_v25 = vmul.f32 %v79_v22, %v46_v23 }
 0x13a   :  { %v92_v26 = vpop.eup %91 }
 0x13b   :  { %v62_v27 = vadd.f32 %v80_v24, %v54_v25  ;;  %v47_v28 = vmul.f32 %v92_v26, %v31_v11 }
 0x13d   :  { %v83_v29 = vpack.c.bf16 %v62_v27, %v62_v27  ;;  %v55_v30 = vmul.f32 %v79_v22, %v47_v28 }
 0x13f   :  { %73 = vst.msk [vmem:[%s135_s3] sm:$0xf] %vm72_vm1, %v83_v29  ;;  %v63_v31 = vadd.f32 %v80_v24, %v55_v30 }
 0x141   :  { %v84_v32 = vpack.c.bf16 %v63_v31, %v63_v31 }
 0x143   :  { %74 = vst.msk [vmem:[%s135_s3 + $0x4] sm:$0xf] %vm72_vm1, %v84_v32 }

// kernel: transformer_forward.13
= control target key start
LH: loop header
LB: loop body
LE: loop exit
PB: predicated region body
PF: predicated region fallthrough
CT: control target
= control target key end

     0   :  { %s1513_s13 = smov 0   ;;  %s1515_s14 = smov 0   ;;  %s1669_s0 = inlined_call_operand.vmem [shape: bf16[2,8,32], index: 0, kind: input, shape index: {}]   ;;  %s1670_s1 = inlined_call_operand.vmem [shape: bf16[2,8,32], index: 1, kind: input, shape index: {}]   ;;  %s1671_s2 = inlined_call_operand.vmem [shape: bf16[32,64], index: 2, kind: input, shape index: {}]   ;;  %s1672_s3 = inlined_call_operand.vmem [shape: f32[1,64], index: 3, kind: input, shape index: {}]   ;;  %s1673_s4 = inlined_call_operand.vmem [shape: bf16[32,32], index: 4, kind: input, shape index: {}]   ;;  %s1674_s5 = inlined_call_operand.vmem [shape: f32[1,32], index: 5, kind: input, shape index: {}]   ;;  %s1675_s6 = inlined_call_operand.vmem [shape: bf16[32,32], index: 6, kind: input, shape index: {}]   ;;  %s1676_s7 = inlined_call_operand.vmem [shape: f32[1,32], index: 7, kind: input, shape index: {}]   ;;  %s1677_s8 = inlined_call_operand.vmem [shape: f32[1,32], index: 8, kind: input, shape index: {}]   ;;  %s1678_s9 = inlined_call_operand.vmem [shape: f32[1,32], index: 9, kind: input, shape index: {}]   ;;  %s1679_s10 = inlined_call_operand.vmem [shape: bf16[2,8,32], index: 10, kind: output, shape index: {}]  }
   0x1   :  { %s1517_s15 = smov 0  }
   0x2 LB: > { %s32_s16 = sadd.s32 1, %s1443_s14  ;;  %p1229_p0 = scmp.ge.s32.totalorder %s1447_s15, 1  ;;  %s1447_s15 = sphi %s1517_s15, %s20_s15   ;;  %s1443_s14 = sphi %s1515_s14, %s1681_s14   ;;  %s1439_s13 = sphi %s1513_s13, %s1680_s13  }
   0x3   : > { %p34_p1 = scmp.ge.s32.totalorder %s32_s16, 2  ;;  %p334_p2 = scmp.lt.s32.totalorder %s1447_s15, 3 }
   0x5   : > { %s1683_s16 = smov (%p34_p1, %s32_s16), 0  ;;  %p335_p3 = pnand %p1229_p0, %p334_p2 }
   0x6   : > { %v1398_v0 = vld [vmem:[%s1671_s2] sm:$0xff] (!%p335_p3)   ;;  %v1449_v1 = vmov (!%p335_p3), 0.0   ;;  %v1399_v2 = vld [vmem:[%s1671_s2 + $0x8] sm:$0xff] (!%p335_p3)   ;;  %vm1450_vm0 = vmmov (!%p335_p3), 0   ;;  %p377_p4 = scmp.lt.s32.totalorder (!%p335_p3), %s1439_s13, 1  ;;  %vm423_vm1 = vcmask (!%p335_p3), 261120  }
   0x7   : > { %338 = sbr.rel (%p335_p3) target bundleno = 1937 (0x791), region = 60  ;;  %1293 = vmatprep.subr.bf16.mxu0 (!%p335_p3), %v1449_v1  ;;  %1301 = vmatprep.subr.bf16.mxu1 (!%p335_p3), %v1449_v1  ;;  %v1233_v6 = vld [vmem:[%s1672_s3] ss:$0 sm:$0xff] (!%p335_p3)  ;;  %vm534_vm2 = vcmask (!%p335_p3), 257024   ;;  %s1451_s30 = smov (!%p335_p3), 96   ;;  %vm553_vm3 = vcmask (!%p335_p3), 64512  }
   0x8   : > { %1294 = vmatpush3.bf16.msra.mxu0 (!%p335_p3), %v1398_v0  ;;  %1297 = vmatprep.mubr.msk.bf16.mxu0 (!%p335_p3), %vm1450_vm0, %v1449_v1  ;;  %s1452_s11 = smov (!%p335_p3), 120   ;;  %s1453_s12 = smov (!%p335_p3), 112   ;;  %v1402_v19 = vld [vmem:[%s1673_s4] sm:$0xff] (!%p335_p3)   ;;  %v1403_v20 = vld [vmem:[%s1673_s4 + $0x8] sm:$0xff] (!%p335_p3)   ;;  %vm616_vm4 = vcmask (!%p335_p3), 1043456   ;;  %vm661_vm5 = vcmask (!%p335_p3), 60416  }
   0x9   : > { %1295 = vmatprep.subr.bf16.mxu0 (!%p335_p3), %v1449_v1  ;;  %1305 = vmatprep.mubr.msk.bf16.mxu1 (!%p335_p3), %vm1450_vm0, %v1449_v1  ;;  %v1237_v60 = vld [vmem:[%s1674_s5] ss:$0 sm:$0xff] (!%p335_p3)  ;;  %s1455_s25 = smov (!%p335_p3), 8   ;;  %s1456_s26 = smov (!%p335_p3), 16   ;;  %vm790_vm6 = vcmask (!%p335_p3), 126016   ;;  %vm910_vm7 = vcmask (!%p335_p3), 191616  }
   0xa   : > { %1302 = vmatpush3.bf16.msra.mxu1 (!%p335_p3), %v1402_v19  ;;  %vm1030_vm8 = vcmask (!%p335_p3), 257216  }
   0xb   : > { %1303 = vmatprep.subr.bf16.mxu1 (!%p335_p3), %v1449_v1 }
   0xc   : > { %1296 = vmatpush3.bf16.msra.mxu0 (!%p335_p3), %v1399_v2 }
   0xd   : > { %1309 = vmatprep.subr.bf16.mxu0 (!%p335_p3), %v1449_v1 }
   0xe   : > { %s1685_s13 = smov (!%p377_p4, %s1439_s13), 1  ;;  %1304 = vmatpush3.bf16.msra.mxu1 %v1403_v20 }
   0xf   : > { %s1544_s21 = sshll.u32 %s1685_s13, 2  ;;  %s1454_s13 = smov 104   ;;  %1315 = vmatprep.subr.bf16.mxu1 %v1449_v1 }
  0x10   : > { %s1550_s24 = scalar_lea.vmem %s1669_s0, %s1544_s21  ;;  %s384_s27 = scalar_lea.vmem %s1670_s1, %s1544_s21 }
  0x11   : > { %v397_v3 = vld [vmem:[%s1550_s24] sm:$0xf]  ;;  %s391_s23 = scalar_lea.vmem %s1679_s10, %s1544_s21 }
  0x12   : > { %v398_v4 = vld [vmem:[%s384_s27] sm:$0xf]  ;;  %1306 = vmatmul.mubr.msk.bf16.vlgmr.msra.gmra.mrb[0].mxu1 %vm423_vm1, %v397_v3 }
  0x13   : > { %v399_v5 = vadd.bf16 %v398_v4, %v397_v3  ;;  %1317 = vmatprep.mubr.msk.bf16.mxu1 %vm1450_vm0, %v1449_v1 }
  0x15   : > { %1298 = vmatmul.mubr.msk.bf16.vlgmr.msra.gmra.mrb[0].mxu0 %vm423_vm1, %v399_v5 }
  0x16   : > { %1311 = vmatprep.mubr.msk.bf16.mxu0 %vm1450_vm0, %v1449_v1 }
  0xe5   : > { %v527_v57 = vpop.f32.mrb[0].mxu1 }
  0xe6   : > { %v1307_v58 = vpop.f32.mrb[1].mxu1  ;;  %v528_v62 = vadd.f32 %v1237_v60, %v527_v57 }
  0xe7   : > { %v530_v59 = vpop.f32.mrb[2].mxu1  ;;  %v1405_v58 = vld [vmem:[%s1675_s6] sm:$0xff]  }
  0xe8   : > { %v461_v7 = vpop.f32.mrb[0].mxu0  ;;  %v1308_v61 = vpop.f32.mrb[3].mxu1  ;;  %v543_v63 = vpack.c.bf16 %v528_v62, %v528_v62  ;;  %v1406_v59 = vld [vmem:[%s1675_s6 + $0x8] sm:$0xff]  }
  0xe9   : > { %v462_v8 = vadd.f32 %v1233_v6, %v461_v7  ;;  %v1299_v9 = vpop.f32.mrb[1].mxu0 }
  0xea   : > { %v464_v10 = vpop.f32.mrb[2].mxu0  ;;  %544 = vst.msk [vmem:[#allocation4] sm:$0xf] %vm534_vm2, %v543_v63 }
  0xeb   : > { %v533_v11 = vpack.c.bf16 %v462_v8, %v462_v8  ;;  %v1300_v12 = vpop.f32.mrb[3].mxu0 }
  0xed   : > { %535 = vst.msk [vmem:[#allocation2] sm:$0xf] %vm534_vm2, %v533_v11  ;;  %539 = vrot.lane.b32.xlu0 %v533_v11, %s1451_s30 }
  0xf1   : > { %v552_v3 = vld [vmem:[#allocation4] sm:$0xf] }
  0xf2   : > { %v618_v4 = vsel %vm616_vm4, %v552_v3, 0 }
  0xf3   : > { %1316 = vmatpush3.bf16.msra.mxu1 %v618_v4 }
  0xf4   : > { %v550_v13 = vld [vmem:[#allocation2] sm:$0xf]  ;;  %1327 = vmatprep.subr.bf16.mxu1 %v1449_v1 }
  0xf5   : > { %v1244_v14 = vcombine.low %v550_v13, %v550_v13 }
  0xf7   : > { %666 = vrot.lane.b32.xlu1 %v1244_v14, %s1452_s11 }
 0x15f   : > { %v540_v15 = vpop.permute.xlu0 %539 }
 0x160   : > { %542 = vst.msk [vmem:[#allocation3] sm:$0xf] %vm534_vm2, %v540_v15  ;;  %v1247_v15 = vcombine.low %v552_v3, %v552_v3 }
 0x167   : > { %v551_v16 = vld [vmem:[#allocation3] sm:$0xf] }
 0x168   : > { %v558_v17 = vsel %vm553_vm3, %v551_v16, 0  ;;  %v1245_v18 = vcombine.low %v551_v16, %v551_v16 }
 0x169   : > { %1310 = vmatpush3.bf16.xpose.msra.mxu0 %v558_v17  ;;  %v667_v23 = vpop.permute.xlu1 %666 }
 0x16a   : > { %671 = vrot.lane.b32.xlu0 %v1245_v18, %s1452_s11  ;;  %794 = vrot.lane.b32.xlu1 %v1245_v18, %s1453_s12 }
 0x16b   : > { %1321 = vmatprep.subr.bf16.mxu0 %v1449_v1 }
 0x16e   : > { %792 = vrot.lane.b32.xlu0 %v1244_v14, %s1453_s12  ;;  %914 = vrot.lane.b32.xlu1 %v1245_v18, %s1454_s13 }
 0x170   : > { %1312 = vmatmul.mubr.msk.bf16.vlgmr.msra.gmra.mrb[4].mxu0 %vm553_vm3, %v550_v13 }
 0x171   : > { %1323 = vmatprep.mubr.msk.bf16.mxu0 %vm1450_vm0, %v1449_v1 }
 0x172   : > { %912 = vrot.lane.b32.xlu0 %v1244_v14, %s1454_s13 }
 0x1dc   : > { %v672_v21 = vpop.permute.xlu0 %671  ;;  %v795_v24 = vpop.permute.xlu1 %794 }
 0x1dd   : > { %v677_v22 = vsel %vm553_vm3, %v672_v21, 0  ;;  %v800_v25 = vsel %vm553_vm3, %v795_v24, 0 }
 0x1de   : > { %1322 = vmatpush3.bf16.xpose.msra.mxu0 %v677_v22 }
 0x1df   : > { %1333 = vmatprep.subr.bf16.mxu0 %v1449_v1 }
 0x1e0   : > { %v915_v26 = vpop.permute.xlu1 %914  ;;  %v793_v27 = vpop.permute.xlu0 %792 }
 0x1e1   : > { %v920_v28 = vsel %vm553_vm3, %v915_v26, 0 }
 0x1e4   : > { %v913_v29 = vpop.permute.xlu0 %912 }
 0x1e5   : > { %1324 = vmatmul.mubr.msk.bf16.vlgmr.msra.gmra.mrb[8].mxu0 %vm553_vm3, %v667_v23 }
 0x1e6   : > { %1334 = vmatpush3.bf16.xpose.msra.mxu0 %v800_v25  ;;  %1335 = vmatprep.mubr.msk.bf16.mxu0 %vm1450_vm0, %v1449_v1 }
 0x1e7   : > { %1345 = vmatprep.subr.bf16.mxu0 %v1449_v1 }
 0x1ed   : > { %1336 = vmatmul.mubr.msk.bf16.vlgmr.msra.gmra.mrb[12].mxu0 %vm553_vm3, %v793_v27 }
 0x1ee   : > { %1346 = vmatpush3.bf16.xpose.msra.mxu0 %v920_v28  ;;  %1347 = vmatprep.mubr.msk.bf16.mxu0 %vm1450_vm0, %v1449_v1 }
 0x1ef   : > { %1357 = vmatprep.subr.bf16.mxu0 %v1449_v1 }
 0x1f5   : > { %1348 = vmatmul.mubr.msk.bf16.vlgmr.msra.gmra.mrb[16].mxu0 %vm553_vm3, %v913_v29 }
 0x1f6   : > { %1361 = vmatprep.mubr.msk.bf16.mxu0 %vm1450_vm0, %v1449_v1  ;;  %1358 = vmatpush3.bf16.msra.mxu0 %v1405_v58 }
 0x1f7   : > { %1359 = vmatprep.subr.bf16.mxu0 %v1449_v1 }
 0x1fa   : > { %1360 = vmatpush3.bf16.msra.mxu0 %v1406_v59 }
 0x243   : > { %v594_v30 = vpop.f32.mrb[4].mxu0 }
 0x244   : > { %v600_v31 = vmul.f32 0.35355338, %v594_v30  ;;  %v1313_v32 = vpop.f32.mrb[5].mxu0 }
 0x245   : > { %v597_v33 = vpop.f32.mrb[6].mxu0 }
 0x246   : > { %v1314_v34 = vpop.f32.mrb[7].mxu0  ;;  %v601_v35 = vsel %vm553_vm3, %v600_v31, -inf }
 0x247   : > { %602 = vmax.xlane.f32.xlu1 %v601_v35 }
 0x2b8   : > { %v713_v36 = vpop.f32.mrb[8].mxu0 }
 0x2b9   : > { %v719_v37 = vmul.f32 0.35355338, %v713_v36  ;;  %v1325_v38 = vpop.f32.mrb[9].mxu0 }
 0x2ba   : > { %v716_v39 = vpop.f32.mrb[10].mxu0 }
 0x2bb   : > { %v1326_v40 = vpop.f32.mrb[11].mxu0  ;;  %v720_v41 = vsel %vm553_vm3, %v719_v37, -inf }
 0x2bc   : > { %721 = vmax.xlane.f32.xlu0 %v720_v41 }
 0x2c0   : > { %v836_v42 = vpop.f32.mrb[12].mxu0 }
 0x2c1   : > { %v842_v43 = vmul.f32 0.35355338, %v836_v42  ;;  %v1337_v44 = vpop.f32.mrb[13].mxu0 }
 0x2c2   : > { %v839_v45 = vpop.f32.mrb[14].mxu0 }
 0x2c3   : > { %v1338_v46 = vpop.f32.mrb[15].mxu0  ;;  %v843_v47 = vsel %vm553_vm3, %v842_v43, -inf }
 0x2c4   : > { %844 = vmax.xlane.f32.xlu0 %v843_v47 }
 0x2c8   : > { %v956_v48 = vpop.f32.mrb[16].mxu0 }
 0x2c9   : > { %v962_v49 = vmul.f32 0.35355338, %v956_v48  ;;  %v1349_v50 = vpop.f32.mrb[17].mxu0 }
 0x2ca   : > { %v959_v51 = vpop.f32.mrb[18].mxu0 }
 0x2cb   : > { %v1350_v52 = vpop.f32.mrb[19].mxu0  ;;  %v963_v53 = vsel %vm553_vm3, %v962_v49, -inf }
 0x2cc   : > { %964 = vmax.xlane.f32.xlu1 %v963_v53 }
 0x2d4   : > { %v603_v54 = vpop.xlane.xlu1 %602 }
 0x2d5   : > { %v604_v55 = vsub.f32 %v600_v31, %v603_v54 }
 0x2d7   : > { %v605_v56 = vmul.f32 1.442695, %v604_v55 }
 0x2d9   : > { %1407 = vpow2.f32 %v605_v56 }
 0x2e3   : > { %v1408_v0 = vpop.eup %1407 }
 0x2e4   : > { %v607_v2 = vsel %vm553_vm3, %v1408_v0, 0.0 }
 0x2e5   : > { %608 = vadd.xlane.f32.xlu0 %v607_v2 }
 0x349   : > { %v722_v5 = vpop.xlane.xlu0 %721 }
 0x34a   : > { %v723_v6 = vsub.f32 %v719_v37, %v722_v5 }
 0x34c   : > { %v724_v7 = vmul.f32 1.442695, %v723_v6  ;;  %v1256_v6 = vld [vmem:[%s1676_s7] ss:$0 sm:$0xff] }
 0x34e   : > { %1409 = vpow2.f32 %v724_v7 }
 0x351   : > { %v845_v8 = vpop.xlane.xlu0 %844 }
 0x352   : > { %v846_v9 = vsub.f32 %v842_v43, %v845_v8 }
 0x354   : > { %v847_v10 = vmul.f32 1.442695, %v846_v9 }
 0x356   : > { %1411 = vpow2.f32 %v847_v10 }
 0x358   : > { %v1410_v11 = vpop.eup %1409 }
 0x359   : > { %v726_v12 = vsel %vm553_vm3, %v1410_v11, 0.0  ;;  %v965_v17 = vpop.xlane.xlu1 %964 }
 0x35a   : > { %727 = vadd.xlane.f32.xlu1 %v726_v12  ;;  %v966_v18 = vsub.f32 %v962_v49, %v965_v17 }
 0x35c   : > { %v967_v20 = vmul.f32 1.442695, %v966_v18 }
 0x360   : > { %v1412_v13 = vpop.eup %1411 }
 0x361   : > { %v849_v14 = vsel %vm553_vm3, %v1412_v13, 0.0 }
 0x362   : > { %850 = vadd.xlane.f32.xlu0 %v849_v14 }
 0x36b   : > { %855 = vrot.lane.b32.xlu1 %v1247_v15, %s1453_s12 }
 0x372   : > { %v609_v16 = vpop.xlane.xlu0 %608 }
 0x373   : > { %1413 = vrcp.f32 %v609_v16 }
 0x374   : > { %1415 = vpow2.f32 %v967_v20 }
 0x378   : > { %735 = vrot.lane.b32.xlu0 %v1247_v15, %s1452_s11  ;;  %s1457_s11 = smov 24  }
 0x37d   : > { %v1414_v19 = vpop.eup %1413 }
 0x37e   : > { %v611_v21 = vmul.f32 %v1414_v19, %v1408_v0  ;;  %v1416_v23 = vpop.eup %1415 }
 0x37f   : > { %v969_v24 = vsel %vm553_vm3, %v1416_v23, 0.0 }
 0x380   : > { %v612_v22 = vpack.c.bf16 %v611_v21, %v611_v21 }
 0x382   : > { %1318 = vmatmul.mubr.msk.bf16.vlgmr.msra.gmra.mrb[4].mxu1 %vm553_vm3, %v612_v22 }
 0x383   : > { %1329 = vmatprep.mubr.msk.bf16.mxu1 %vm1450_vm0, %v1449_v1 }
 0x38f   : > { %970 = vadd.xlane.f32.xlu1 %v969_v24  ;;  %v1260_v24 = vld [vmem:[%s1677_s8] ss:$0 sm:$0xff] }
 0x3a0   : > { %975 = vrot.lane.b32.xlu1 %v1247_v15, %s1454_s13 }
 0x3e7   : > { %v728_v25 = vpop.xlane.xlu1 %727 }
 0x3e8   : > { %1417 = vrcp.f32 %v728_v25 }
 0x3eb   : > { %v856_v31 = vpop.permute.xlu1 %855 }
 0x3ec   : > { %v861_v33 = vsel %vm616_vm4, %v856_v31, 0 }
 0x3ef   : > { %v851_v26 = vpop.xlane.xlu0 %850 }
 0x3f0   : > { %1419 = vrcp.f32 %v851_v26  ;;  %v1261_v26 = vld [vmem:[%s1678_s9] ss:$0 sm:$0xff] }
 0x3f2   : > { %v1418_v27 = vpop.eup %1417 }
 0x3f3   : > { %v730_v28 = vmul.f32 %v1418_v27, %v1410_v11  ;;  %v736_v29 = vpop.permute.xlu0 %735 }
 0x3f4   : > { %v741_v30 = vsel %vm616_vm4, %v736_v29, 0 }
 0x3f5   : > { %1328 = vmatpush3.bf16.msra.mxu1 %v741_v30  ;;  %v731_v32 = vpack.c.bf16 %v730_v28, %v730_v28 }
 0x3f6   : > { %1339 = vmatprep.subr.bf16.mxu1 %v1449_v1 }
 0x3f8   : > { %1330 = vmatmul.mubr.msk.bf16.vlgmr.msra.gmra.mrb[8].mxu1 %vm553_vm3, %v731_v32 }
 0x3f9   : > { %1340 = vmatpush3.bf16.msra.mxu1 %v861_v33  ;;  %1341 = vmatprep.mubr.msk.bf16.mxu1 %vm1450_vm0, %v1449_v1 }
 0x3fa   : > { %v1420_v34 = vpop.eup %1419  ;;  %1351 = vmatprep.subr.bf16.mxu1 %v1449_v1 }
 0x3fb   : > { %v853_v35 = vmul.f32 %v1420_v34, %v1412_v13 }
 0x3fd   : > { %v854_v36 = vpack.c.bf16 %v853_v35, %v853_v35 }
 0x400   : > { %1342 = vmatmul.mubr.msk.bf16.vlgmr.msra.gmra.mrb[12].mxu1 %vm553_vm3, %v854_v36 }
 0x401   : > { %1353 = vmatprep.mubr.msk.bf16.mxu1 %vm1450_vm0, %v1449_v1  ;;  %v1102_v1 = vld [vmem:[%s1550_s24] sm:$0xf] }
 0x402   : > { %v1103_v7 = vunpack.c.l.bf16 %v1102_v1 }
 0x41c   : > { %v971_v37 = vpop.xlane.xlu1 %970 }
 0x41d   : > { %1421 = vrcp.f32 %v971_v37 }
 0x420   : > { %v976_v38 = vpop.permute.xlu1 %975 }
 0x421   : > { %v981_v39 = vsel %vm616_vm4, %v976_v38, 0 }
 0x422   : > { %1352 = vmatpush3.bf16.msra.mxu1 %v981_v39 }
 0x427   : > { %v1422_v40 = vpop.eup %1421 }
 0x428   : > { %v973_v41 = vmul.f32 %v1422_v40, %v1416_v23 }
 0x42a   : > { %v974_v42 = vpack.c.bf16 %v973_v41, %v973_v41 }
 0x42c   : > { %1354 = vmatmul.mubr.msk.bf16.vlgmr.msra.gmra.mrb[16].mxu1 %vm553_vm3, %v974_v42 }
 0x455   : > { %v654_v43 = vpop.f32.mrb[4].mxu1 }
 0x456   : > { %v660_v44 = vpack.c.bf16 %v654_v43, %v654_v43  ;;  %v1319_v45 = vpop.f32.mrb[5].mxu1 }
 0x457   : > { %v657_v46 = vpop.f32.mrb[6].mxu1 }
 0x458   : > { %662 = vst.msk [vmem:[#allocation5] sm:$0xf] %vm661_vm5, %v660_v44  ;;  %v1320_v47 = vpop.f32.mrb[7].mxu1 }
 0x4cb   : > { %v777_v48 = vpop.f32.mrb[8].mxu1 }
 0x4cc   : > { %v1265_v49 = vpack.c.bf16 %v777_v48, %v777_v48  ;;  %v1331_v50 = vpop.f32.mrb[9].mxu1 }
 0x4cd   : > { %v780_v51 = vpop.f32.mrb[10].mxu1 }
 0x4ce   : > { %787 = vrot.lane.b32.xlu0 %v1265_v49, %s1455_s25  ;;  %v1332_v52 = vpop.f32.mrb[11].mxu1 }
 0x4d3   : > { %v897_v53 = vpop.f32.mrb[12].mxu1 }
 0x4d4   : > { %v1266_v54 = vpack.c.bf16 %v897_v53, %v897_v53  ;;  %v1343_v55 = vpop.f32.mrb[13].mxu1 }
 0x4d5   : > { %v900_v56 = vpop.f32.mrb[14].mxu1 }
 0x4d6   : > { %907 = vrot.lane.b32.xlu1 %v1266_v54, %s1456_s26  ;;  %v1344_v57 = vpop.f32.mrb[15].mxu1 }
 0x4ff   : > { %v1017_v60 = vpop.f32.mrb[16].mxu1 }
 0x500   : > { %v1267_v61 = vpack.c.bf16 %v1017_v60, %v1017_v60  ;;  %v1355_v62 = vpop.f32.mrb[17].mxu1 }
 0x501   : > { %v1020_v63 = vpop.f32.mrb[18].mxu1 }
 0x502   : > { %1027 = vrot.lane.b32.xlu0 %v1267_v61, %s1457_s11  ;;  %v1356_v0 = vpop.f32.mrb[19].mxu1 }
 0x540   : > { %v788_v2 = vpop.permute.xlu0 %787 }
 0x541   : > { %791 = vst.msk [vmem:[#allocation5] sm:$0xf] %vm790_vm6, %v788_v2 }
 0x548   : > { %v908_v3 = vpop.permute.xlu1 %907 }
 0x549   : > { %911 = vst.msk [vmem:[#allocation5] sm:$0xf] %vm910_vm7, %v908_v3 }
 0x574   : > { %v1028_v4 = vpop.permute.xlu0 %1027 }
 0x575   : > { %1031 = vst.msk [vmem:[#allocation5] sm:$0xf] %vm1030_vm8, %v1028_v4 }
 0x57c   : > { %v1032_v5 = vld [vmem:[#allocation5] sm:$0xf] }
 0x57d   : > { %1362 = vmatmul.mubr.msk.bf16.vlgmr.msra.gmra.mrb[20].mxu0 %vm423_vm1, %v1032_v5 }
 0x650   : > { %v1094_v8 = vpop.f32.mrb[20].mxu0 }
 0x651   : > { %v1095_v9 = vadd.f32 %v1256_v6, %v1094_v8  ;;  %v1363_v10 = vpop.f32.mrb[21].mxu0 }
 0x652   : > { %v1097_v11 = vpop.f32.mrb[22].mxu0 }
 0x653   : > { %v1364_v12 = vpop.f32.mrb[23].mxu0  ;;  %v1104_v13 = vadd.f32 %v1103_v7, %v1095_v9 }
 0x655   : > { %v1107_v14 = vsel %vm423_vm1, %v1104_v13, 0.0 }
 0x656   : > { %1108 = vadd.xlane.f32.xlu1 %v1107_v14 }
 0x6e3   : > { %v1109_v15 = vpop.xlane.xlu1 %1108 }
 0x6e4   : > { %v1111_v16 = vmul.f32 0.03125, %v1109_v15 }
 0x6e6   : > { %v1112_v17 = vsub.f32 %v1104_v13, %v1111_v16 }
 0x6e8   : > { %v1113_v18 = vmul.f32 %v1112_v17, %v1112_v17 }
 0x6ea   : > { %v1114_v19 = vsel %vm423_vm1, %v1113_v18, 0.0 }
 0x6eb   : > { %1115 = vadd.xlane.f32.xlu0 %v1114_v19 }
 0x778   : > { %v1116_v20 = vpop.xlane.xlu0 %1115 }
 0x779   : > { %v1117_v21 = vmul.f32 0.03125, %v1116_v20 }
 0x77b   : > { %v1118_v22 = vadd.f32 1e-05, %v1117_v21 }
 0x77d   : > { %1423 = vrsqrt.f32 %v1118_v22 }
 0x787   : > { %v1424_v23 = vpop.eup %1423 }
 0x788   : > { %v1120_v25 = vmul.f32 %v1424_v23, %v1112_v17 }
 0x78a   : > { %v1127_v27 = vmul.f32 %v1260_v24, %v1120_v25 }
 0x78c   : > { %v1134_v28 = vadd.f32 %v1261_v26, %v1127_v27 }
 0x78e   : > { %v1135_v29 = vpack.c.bf16 %v1134_v28, %v1134_v28 }
 0x790   : > { %1137 = vst.msk [vmem:[%s391_s23] sm:$0xf] %vm534_vm2, %v1135_v29 }
 0x791 PF: > { %s20_s15 = sadd.s32 1, %s1447_s15   ;;  %s1680_s13 = smov %s1443_s14 }
 0x792   : > { %p17_p5 = scmp.ge.s32.totalorder %s20_s15, 4   ;;  %s1681_s14 = smov %s1683_s16 }
 0x794   :  { %19 = sbr.rel (!%p17_p5) target bundleno = 2 (0x2), region = 99 }

</bundles_post_ra>
